<compile_context>
chip_gen: v7x
topology: tpu7x:2x2x1
jax: 0.10.0
libtpu: 0.0.40
codegen_flags: <defaults>
</compile_context>

<pallas_src>
import functools

import jax
import jax.numpy as jnp
from jax.experimental import pallas as pl
from jax.experimental.pallas import tpu as pltpu

LANE = 128                      # TPU vreg lane width
MM_DTYPE = jnp.bfloat16         # matmul operand dtype (fp32 accumulation)


def _round_up(x, m):
    return (x + m - 1) // m * m


def _pad_axis(a, axis, target):
    pad = [(0, 0)] * a.ndim
    pad[axis] = (0, target - a.shape[axis])
    return jnp.pad(a, pad)


# ----------------------------------------------------------------------------
# In-kernel helpers
# ----------------------------------------------------------------------------
def _layer_norm(x, gamma, beta, n_real, eps=1e-12):
    """LayerNorm over the first `n_real` lanes of a lane-padded [S, Hp] value.

    Uses raw moments: padded lanes of x are exactly zero, so sum(x) / sum(x*x)
    only see real lanes and no lane-mask multiplies are required.  gamma/beta
    are zero in padded lanes, so the output's padded lanes stay exactly zero.
    """
    inv_n = 1.0 / float(n_real)
    mu = jnp.sum(x, axis=-1, keepdims=True) * inv_n
    var = jnp.sum(x * x, axis=-1, keepdims=True) * inv_n - mu * mu
    return (x - mu) * jax.lax.rsqrt(var + eps) * gamma + beta


def _gelu(x):
    # TODO(synk): HF BERT uses exact erf-GELU; tanh approximation used here for
    # guaranteed Mosaic lowering (~1e-3 close). gelu(0)==0 keeps padded lanes 0.
    c = jnp.sqrt(2.0 / jnp.pi).astype(x.dtype)
    return 0.5 * x * (1.0 + jnp.tanh(c * (x + 0.044715 * x * x * x)))


# ----------------------------------------------------------------------------
# Fused kernel: embedding gather + embeddings-LN + all encoder layers +
# mean-pool + fc.   grid = (batch,);  all weights VMEM-resident.
# ----------------------------------------------------------------------------
def fused_bert_kernel(
    ids_ref, bias_ref,                       # per-batch [S,1] ids, [1,S] bias
    wemb_ref, pt_ref, embln_ref,             # word table, pos+type, emb LN
    wqkv_ref, bqkv_ref, wo_ref,              # [L,Hp,3H] bf16, [L,1,3H], [L,H,Hp]
    wi_ref, bi_ref, wd_ref, vecs_ref,        # FFN weights + [L,8,Hp] vec slab
    fcw_ref, fcb_ref,                        # final projection
    out_ref,                                 # [1, Ep]
    *, hidden, num_heads):
    S, Hp = pt_ref.shape
    Vp = wemb_ref.shape[0]
    L = wqkv_ref.shape[0]
    hd = hidden // num_heads

    # ---- word-embedding gather folded in as an exact one-hot matmul ---------
    # TODO(synk): at production vocab sizes replace this with a scalar-prefetch
    # row gather (PrefetchScalarGridSpec + pl.Element) instead of one-hot @ table.
    ids = ids_ref[...]                                           # [S, 1] int32
    one_hot = (ids == jax.lax.broadcasted_iota(jnp.int32, (S, Vp), 1)
               ).astype(jnp.float32)                             # [S, Vp]
    emb = jnp.dot(one_hot, wemb_ref[...],
                  preferred_element_type=jnp.float32) + pt_ref[...]
    gln = embln_ref[...]                                         # [2, Hp]
    x = _layer_norm(emb, gln[0:1], gln[1:2], hidden)             # [S, Hp]

    bias = bias_ref[...]                                         # [1, S]

    # ---- encoder layers: static loop, all weights resident in VMEM ----------
    # TODO(synk): at production layer counts switch back to streaming per-layer
    # slabs on an "arbitrary" grid axis (or lax.fori_loop + dynamic ref[l]).
    for l in range(L):
        x_bf = x.astype(MM_DTYPE)

        # QKV: single matmul, N = 3*hidden columns (scale pre-folded into Q).
        qkv = jnp.dot(x_bf, wqkv_ref[l],
                      preferred_element_type=jnp.float32) + bqkv_ref[l]  # [S,3H]

        # Per-head attention (nh small & static).  Full [S,S] scores are fine
        # at S=16.  TODO(synk): use online-softmax key tiling for large S.
        ctx_parts = []
        for h in range(num_heads):
            qh = qkv[:, h * hd:(h + 1) * hd].astype(MM_DTYPE)
            kh = qkv[:, hidden + h * hd: hidden + (h + 1) * hd].astype(MM_DTYPE)
            vh = qkv[:, 2 * hidden + h * hd: 2 * hidden + (h + 1) * hd
                     ].astype(MM_DTYPE)
            s = jax.lax.dot_general(qh, kh, (((1,), (1,)), ((), ())),
                                    preferred_element_type=jnp.float32)  # [S,S]
            s = s + bias
            s = s - jnp.max(s, axis=-1, keepdims=True)
            p = jnp.exp(s)
            p = p * pl.reciprocal(jnp.sum(p, axis=-1, keepdims=True), approx=True)
            ctx_parts.append(jnp.dot(p.astype(MM_DTYPE), vh,
                                     preferred_element_type=jnp.float32))  # [S,hd]
        attn_in = jnp.concatenate(ctx_parts, axis=-1)            # [S, H]

        vec = vecs_ref[l]                                        # [8, Hp]
        bo, ln1g, ln1b = vec[0:1], vec[1:2], vec[2:3]
        bd, ln2g, ln2b = vec[3:4], vec[4:5], vec[5:6]

        # Output projection: single MXU contraction over all heads.
        attn_out = jnp.dot(attn_in.astype(MM_DTYPE), wo_ref[l],
                           preferred_element_type=jnp.float32) + bo      # [S,Hp]
        x1 = _layer_norm(x + attn_out, ln1g, ln1b, hidden)

        # Feed-forward.
        h1 = jnp.dot(x1.astype(MM_DTYPE), wi_ref[l],
                     preferred_element_type=jnp.float32) + bi_ref[l]     # [S,Ip]
        h1 = _gelu(h1)
        h2 = jnp.dot(h1.astype(MM_DTYPE), wd_ref[l],
                     preferred_element_type=jnp.float32) + bd            # [S,Hp]
        x = _layer_norm(x1 + h2, ln2g, ln2b, hidden)

    # ---- epilogue: hn.mean(1) + fc ------------------------------------------
    pooled = jnp.sum(x, axis=0, keepdims=True) * (1.0 / float(S))        # [1,Hp]
    out_ref[...] = (jnp.dot(pooled.astype(MM_DTYPE), fcw_ref[...],
                            preferred_element_type=jnp.float32)
                    + fcb_ref[...])


# ----------------------------------------------------------------------------
# Wrapper (mirrors BERTTransformerRecipeEmbedding.forward, get_tokens == False)
# ----------------------------------------------------------------------------
def recipe_embedding_forward(all_recipe, packed, *, truncation_limit):
    H, E = packed["hidden"], packed["dim_emb"]
    Ep = packed["Ep"]
    nh = packed["num_heads"]

    input_ids = all_recipe[:, :truncation_limit].astype(jnp.int32)       # [B, S]
    B, S = input_ids.shape
    mask = (input_ids != 0).astype(jnp.float32)
    attn_bias = ((1.0 - mask) * -10000.0)[:, None, :]                    # [B,1,S]
    ids3 = input_ids[:, :, None]                                         # [B,S,1]
    pos_type = packed["pos_emb"][:S] + packed["type_emb"]                # [S,Hp]

    def full(a):  # whole array resident in VMEM, DMA'd once (constant index map)
        nd = a.ndim
        return pl.BlockSpec(a.shape, lambda b: (0,) * nd)

    in_specs = [
        pl.BlockSpec((None, S, 1), lambda b: (b, 0, 0)),   # input ids
        pl.BlockSpec((None, 1, S), lambda b: (b, 0, 0)),   # attention-mask bias
        full(packed["word_emb"]), full(pos_type), full(packed["emb_ln"]),
        full(packed["wqkv"]), full(packed["bqkv"]), full(packed["wo"]),
        full(packed["wi"]), full(packed["bi"]), full(packed["wd"]),
        full(packed["vecs"]),
        full(packed["fc_w"]), full(packed["fc_b"]),
    ]

    out = pl.pallas_call(
        functools.partial(fused_bert_kernel, hidden=H, num_heads=nh),
        grid=(B,),
        in_specs=in_specs,
        out_specs=pl.BlockSpec((None, 1, Ep), lambda b: (b, 0, 0)),
        out_shape=jax.ShapeDtypeStruct((B, 1, Ep), jnp.float32),
        compiler_params=pltpu.CompilerParams(
            dimension_semantics=("parallel",)),   # v7x: 2-TC batch sharding
    )(ids3, attn_bias, packed["word_emb"], pos_type, packed["emb_ln"],
      packed["wqkv"], packed["bqkv"], packed["wo"],
      packed["wi"], packed["bi"], packed["wd"], packed["vecs"],
      packed["fc_w"], packed["fc_b"])

    return out[:, 0, :E]                 # strip lane padding of dim_emb


# ----------------------------------------------------------------------------
# Parameter init (deterministic, synthetic) and packing for the kernel layout
# ----------------------------------------------------------------------------
def _nrm(key, i, shape, scale=0.02):
    return scale * jax.random.normal(jax.random.fold_in(key, i), shape, jnp.float32)


def init_params(key, vocab_size, max_pos, H, I, E, num_layers):
    params = {
        "word_emb": _nrm(key, 0, (vocab_size, H)),
        "pos_emb": _nrm(key, 1, (max_pos, H)),
        "type_emb": _nrm(key, 2, (1, H)),            # token_type_id == 0
        "emb_ln_g": jnp.ones((1, H), jnp.float32),
        "emb_ln_b": jnp.zeros((1, H), jnp.float32),
        "fc_w": _nrm(key, 3, (H, E)),
        "fc_b": jnp.zeros((1, E), jnp.float32),
        "layers": [],
    }
    for l in range(num_layers):
        base = 100 + 10 * l
        params["layers"].append({
            "wq": _nrm(key, base + 0, (H, H)), "bq": jnp.zeros((1, H), jnp.float32),
            "wk": _nrm(key, base + 1, (H, H)), "bk": jnp.zeros((1, H), jnp.float32),
            "wv": _nrm(key, base + 2, (H, H)), "bv": jnp.zeros((1, H), jnp.float32),
            "wo": _nrm(key, base + 3, (H, H)), "bo": jnp.zeros((1, H), jnp.float32),
            "ln1_g": jnp.ones((1, H), jnp.float32), "ln1_b": jnp.zeros((1, H), jnp.float32),
            "wi": _nrm(key, base + 4, (H, I)), "bi": jnp.zeros((1, I), jnp.float32),
            "wd": _nrm(key, base + 5, (I, H)), "bd": jnp.zeros((1, H), jnp.float32),
            "ln2_g": jnp.ones((1, H), jnp.float32), "ln2_b": jnp.zeros((1, H), jnp.float32),
        })
    return params


def pack_params(params, num_heads):
    """Lane-dense padding, layer-stacked slabs, fused (pre-scaled) QKV,
    coalesced per-layer bias/LN row vectors, bf16 matmul weights."""
    H = params["word_emb"].shape[1]
    I = params["layers"][0]["wi"].shape[1]
    E = params["fc_w"].shape[1]
    V = params["word_emb"].shape[0]
    L = len(params["layers"])
    hd = H // num_heads
    Hp, Ip, Ep = (_round_up(d, LANE) for d in (H, I, E))
    Vp = _round_up(V, 8)
    scale = 1.0 / float(hd) ** 0.5
    layers = params["layers"]

    # Fused QKV: columns [q_h0..q_hN | k_h0.. | v_h0..]; 1/sqrt(hd) folded into Q.
    wqkv = jnp.stack([
        _pad_axis(jnp.concatenate([lp["wq"] * scale, lp["wk"], lp["wv"]], axis=1), 0, Hp)
        for lp in layers]).astype(MM_DTYPE)                                # [L,Hp,3H]
    bqkv = jnp.stack([
        jnp.concatenate([lp["bq"] * scale, lp["bk"], lp["bv"]], axis=1)
        for lp in layers])                                                 # [L,1,3H]

    wo = jnp.stack([_pad_axis(lp["wo"], 1, Hp) for lp in layers]).astype(MM_DTYPE)
    wi = jnp.stack([_pad_axis(_pad_axis(lp["wi"], 0, Hp), 1, Ip)
                    for lp in layers]).astype(MM_DTYPE)                    # [L,Hp,Ip]
    bi = jnp.stack([_pad_axis(lp["bi"], 1, Ip) for lp in layers])          # [L,1,Ip]
    wd = jnp.stack([_pad_axis(_pad_axis(lp["wd"], 0, Ip), 1, Hp)
                    for lp in layers]).astype(MM_DTYPE)                    # [L,Ip,Hp]

    # One coalesced f32 slab per layer: bo, ln1_g, ln1_b, bd, ln2_g, ln2_b, 0, 0.
    vecs = jnp.stack([
        _pad_axis(jnp.concatenate([lp["bo"], lp["ln1_g"], lp["ln1_b"],
                                   lp["bd"], lp["ln2_g"], lp["ln2_b"],
                                   jnp.zeros((2, H), jnp.float32)], axis=0), 1, Hp)
        for lp in layers])                                                 # [L,8,Hp]

    return {
        "hidden": H, "inter": I, "dim_emb": E, "num_heads": num_heads,
        "num_layers": L, "Hp": Hp, "Ip": Ip, "Ep": Ep, "Vp": Vp,
        "word_emb": _pad_axis(_pad_axis(params["word_emb"], 0, Vp), 1, Hp),
        "pos_emb": _pad_axis(params["pos_emb"], 1, Hp),
        "type_emb": _pad_axis(params["type_emb"], 1, Hp),
        "emb_ln": _pad_axis(jnp.concatenate([params["emb_ln_g"],
                                             params["emb_ln_b"]], axis=0), 1, Hp),
        "wqkv": wqkv, "bqkv": bqkv, "wo": wo,
        "wi": wi, "bi": bi, "wd": wd, "vecs": vecs,
        "fc_w": _pad_axis(_pad_axis(params["fc_w"], 0, Hp), 1, Ep).astype(MM_DTYPE),
        "fc_b": _pad_axis(params["fc_b"], 1, Ep),
    }


# ----------------------------------------------------------------------------
if __name__ == "__main__":
    B = 2                 # batch
    SEQ = 16              # truncation_limit
    HIDDEN = 32           # bert_config.hidden_size
    INTER = 64            # intermediate_size
    DIM_EMB = 24          # opt['dim_emb']
    NUM_HEADS = 2
    NUM_LAYERS = 2
    VOCAB = 50

    key = jax.random.PRNGKey(0)
    pkey, dkey = jax.random.split(key)
    params = init_params(pkey, VOCAB, SEQ, HIDDEN, INTER, DIM_EMB, NUM_LAYERS)
    packed = pack_params(params, NUM_HEADS)

    # synthetic recipe: concat(title, ingredients, instructions) along seq axis
    title = jax.random.randint(jax.random.fold_in(dkey, 0), (B, 4), 1, VOCAB)
    ingrs = jax.random.randint(jax.random.fold_in(dkey, 1), (B, 6), 1, VOCAB)
    instrs = jax.random.randint(jax.random.fold_in(dkey, 2), (B, 10), 1, VOCAB)
    all_recipe = jnp.concatenate([title, ingrs, instrs], axis=-1).astype(jnp.int32)
    # simulate padding (token id 0 -> attention mask 0)
    all_recipe = all_recipe.at[0, 12:].set(0).at[1, 15:].set(0)

    out = recipe_embedding_forward(all_recipe, packed, truncation_limit=SEQ)
    out = jax.block_until_ready(out)
    assert out.shape == (B, DIM_EMB) and out.dtype == jnp.float32
    assert bool(jnp.all(jnp.isfinite(out)))
    print("KERNEL_OK")
</pallas_src>

<mosaic_0001>
module attributes {stable_mosaic.version = 11 : i64} {
  func.func @fused_bert_kernel(%arg0: i32, %arg1: memref<1x16x1xi32, #tpu.memory_space<vmem>>, %arg2: memref<1x1x16xf32, #tpu.memory_space<vmem>>, %arg3: memref<56x128xf32, #tpu.memory_space<vmem>>, %arg4: memref<16x128xf32, #tpu.memory_space<vmem>>, %arg5: memref<2x128xf32, #tpu.memory_space<vmem>>, %arg6: memref<2x128x96xbf16, #tpu.memory_space<vmem>>, %arg7: memref<2x1x96xf32, #tpu.memory_space<vmem>>, %arg8: memref<2x32x128xbf16, #tpu.memory_space<vmem>>, %arg9: memref<2x128x128xbf16, #tpu.memory_space<vmem>>, %arg10: memref<2x1x128xf32, #tpu.memory_space<vmem>>, %arg11: memref<2x128x128xbf16, #tpu.memory_space<vmem>>, %arg12: memref<2x8x128xf32, #tpu.memory_space<vmem>>, %arg13: memref<128x128xbf16, #tpu.memory_space<vmem>>, %arg14: memref<1x128xf32, #tpu.memory_space<vmem>>, %arg15: memref<1x1x128xf32, #tpu.memory_space<vmem>>) attributes {dimension_semantics = [#tpu.dimension_semantics<parallel>], iteration_bounds = array<i64: 2>, scalar_prefetch = 0 : i64, scratch_operands = 0 : i64, tpu.core_type = #tpu.core_type<tc>, window_params = [{transform_indices = @transform_0, window_bounds = array<i64: 1, 16, 1>}, {transform_indices = @transform_1, window_bounds = array<i64: 1, 1, 16>}, {pipeline_mode = #tpu.pipeline_mode<synchronous>, transform_indices = @transform_2, window_bounds = array<i64: 56, 128>}, {pipeline_mode = #tpu.pipeline_mode<synchronous>, transform_indices = @transform_3, window_bounds = array<i64: 16, 128>}, {pipeline_mode = #tpu.pipeline_mode<synchronous>, transform_indices = @transform_4, window_bounds = array<i64: 2, 128>}, {pipeline_mode = #tpu.pipeline_mode<synchronous>, transform_indices = @transform_5, window_bounds = array<i64: 2, 128, 96>}, {pipeline_mode = #tpu.pipeline_mode<synchronous>, transform_indices = @transform_6, window_bounds = array<i64: 2, 1, 96>}, {pipeline_mode = #tpu.pipeline_mode<synchronous>, transform_indices = @transform_7, window_bounds = array<i64: 2, 32, 128>}, {pipeline_mode = #tpu.pipeline_mode<synchronous>, transform_indices = @transform_8, window_bounds = array<i64: 2, 128, 128>}, {pipeline_mode = #tpu.pipeline_mode<synchronous>, transform_indices = @transform_9, window_bounds = array<i64: 2, 1, 128>}, {pipeline_mode = #tpu.pipeline_mode<synchronous>, transform_indices = @transform_10, window_bounds = array<i64: 2, 128, 128>}, {pipeline_mode = #tpu.pipeline_mode<synchronous>, transform_indices = @transform_11, window_bounds = array<i64: 2, 8, 128>}, {pipeline_mode = #tpu.pipeline_mode<synchronous>, transform_indices = @transform_12, window_bounds = array<i64: 128, 128>}, {pipeline_mode = #tpu.pipeline_mode<synchronous>, transform_indices = @transform_13, window_bounds = array<i64: 1, 128>}, {transform_indices = @transform_14, window_bounds = array<i64: 1, 1, 128>}]} {
    %c0 = arith.constant 0 : index
    %c0_0 = arith.constant 0 : index
    %c0_1 = arith.constant 0 : index
    %0 = vector.load %arg1[%c0, %c0_0, %c0_1] : memref<1x16x1xi32, #tpu.memory_space<vmem>>, vector<1x16x1xi32>
    %1 = vector.shape_cast %0 : vector<1x16x1xi32> to vector<16x1xi32>
    %2 = tpu.iota {dimensions = array<i32: 1>} : vector<16x56xi32>
    %3 = vector.broadcast %1 : vector<16x1xi32> to vector<16x56xi32>
    %4 = arith.cmpi eq, %3, %2 : vector<16x56xi32>
    %5 = arith.extui %4 : vector<16x56xi1> to vector<16x56xi32>
    %6 = arith.sitofp %5 : vector<16x56xi32> to vector<16x56xf32>
    %c0_2 = arith.constant 0 : index
    %c0_3 = arith.constant 0 : index
    %7 = vector.load %arg3[%c0_2, %c0_3] : memref<56x128xf32, #tpu.memory_space<vmem>>, vector<56x128xf32>
    %cst = arith.constant dense<0.000000e+00> : vector<16x128xf32>
    %8 = tpu.matmul %6, %7, %cst {dimension_numbers = #tpu.dot_dimension_numbers<[1], [0], [0], [1], [0, 0, 1, 1], [], []>} : vector<16x56xf32>, vector<56x128xf32>, vector<16x128xf32> -> vector<16x128xf32>
    %c0_4 = arith.constant 0 : index
    %c0_5 = arith.constant 0 : index
    %9 = vector.load %arg4[%c0_4, %c0_5] : memref<16x128xf32, #tpu.memory_space<vmem>>, vector<16x128xf32>
    %10 = arith.addf %8, %9 : vector<16x128xf32>
    %c0_6 = arith.constant 0 : index
    %c0_7 = arith.constant 0 : index
    %11 = vector.load %arg5[%c0_6, %c0_7] : memref<2x128xf32, #tpu.memory_space<vmem>>, vector<2x128xf32>
    %12 = vector.extract_strided_slice %11 {offsets = [0, 0], sizes = [1, 128], strides = [1, 1]} : vector<2x128xf32> to vector<1x128xf32>
    %13 = vector.extract_strided_slice %11 {offsets = [1, 0], sizes = [1, 128], strides = [1, 1]} : vector<2x128xf32> to vector<1x128xf32>
    %cst_8 = arith.constant dense<0.000000e+00> : vector<16xf32>
    %14 = vector.multi_reduction <add>, %10, %cst_8 [1] : vector<16x128xf32> to vector<16xf32>
    %15 = vector.shape_cast %14 : vector<16xf32> to vector<16x1xf32>
    %cst_9 = arith.constant 3.125000e-02 : f32
    %16 = vector.broadcast %cst_9 : f32 to vector<16x1xf32>
    %17 = arith.mulf %15, %16 : vector<16x1xf32>
    %18 = arith.mulf %10, %10 : vector<16x128xf32>
    %cst_10 = arith.constant dense<0.000000e+00> : vector<16xf32>
    %19 = vector.multi_reduction <add>, %18, %cst_10 [1] : vector<16x128xf32> to vector<16xf32>
    %20 = vector.shape_cast %19 : vector<16xf32> to vector<16x1xf32>
    %cst_11 = arith.constant 3.125000e-02 : f32
    %21 = vector.broadcast %cst_11 : f32 to vector<16x1xf32>
    %22 = arith.mulf %20, %21 : vector<16x1xf32>
    %23 = arith.mulf %17, %17 : vector<16x1xf32>
    %24 = arith.subf %22, %23 : vector<16x1xf32>
    %25 = vector.broadcast %17 : vector<16x1xf32> to vector<16x128xf32>
    %26 = arith.subf %10, %25 : vector<16x128xf32>
    %cst_12 = arith.constant 9.99999996E-13 : f32
    %27 = vector.broadcast %cst_12 : f32 to vector<16x1xf32>
    %28 = arith.addf %24, %27 : vector<16x1xf32>
    %29 = math.rsqrt %28 : vector<16x1xf32>
    %30 = vector.broadcast %29 : vector<16x1xf32> to vector<16x128xf32>
    %31 = arith.mulf %26, %30 : vector<16x128xf32>
    %32 = vector.broadcast %12 : vector<1x128xf32> to vector<16x128xf32>
    %33 = arith.mulf %31, %32 : vector<16x128xf32>
    %34 = vector.broadcast %13 : vector<1x128xf32> to vector<16x128xf32>
    %35 = arith.addf %33, %34 : vector<16x128xf32>
    %c0_13 = arith.constant 0 : index
    %c0_14 = arith.constant 0 : index
    %c0_15 = arith.constant 0 : index
    %36 = vector.load %arg2[%c0_13, %c0_14, %c0_15] : memref<1x1x16xf32, #tpu.memory_space<vmem>>, vector<1x1x16xf32>
    %37 = vector.shape_cast %36 : vector<1x1x16xf32> to vector<1x16xf32>
    %38 = arith.truncf %35 : vector<16x128xf32> to vector<16x128xbf16>
    %c0_16 = arith.constant 0 : index
    %c0_17 = arith.constant 0 : index
    %c0_18 = arith.constant 0 : index
    %39 = vector.load %arg6[%c0_16, %c0_17, %c0_18] : memref<2x128x96xbf16, #tpu.memory_space<vmem>>, vector<1x128x96xbf16>
    %40 = vector.shape_cast %39 : vector<1x128x96xbf16> to vector<128x96xbf16>
    %cst_19 = arith.constant dense<0.000000e+00> : vector<16x96xf32>
    %41 = tpu.matmul %38, %40, %cst_19 {dimension_numbers = #tpu.dot_dimension_numbers<[1], [0], [0], [1], [0, 0, 1, 1], [], []>} : vector<16x128xbf16>, vector<128x96xbf16>, vector<16x96xf32> -> vector<16x96xf32>
    %c0_20 = arith.constant 0 : index
    %c0_21 = arith.constant 0 : index
    %c0_22 = arith.constant 0 : index
    %42 = vector.load %arg7[%c0_20, %c0_21, %c0_22] : memref<2x1x96xf32, #tpu.memory_space<vmem>>, vector<1x1x96xf32>
    %43 = vector.shape_cast %42 : vector<1x1x96xf32> to vector<1x96xf32>
    %44 = vector.broadcast %43 : vector<1x96xf32> to vector<16x96xf32>
    %45 = arith.addf %41, %44 : vector<16x96xf32>
    %46 = vector.extract_strided_slice %45 {offsets = [0, 0], sizes = [16, 16], strides = [1, 1]} : vector<16x96xf32> to vector<16x16xf32>
    %47 = arith.truncf %46 : vector<16x16xf32> to vector<16x16xbf16>
    %48 = vector.extract_strided_slice %45 {offsets = [0, 32], sizes = [16, 16], strides = [1, 1]} : vector<16x96xf32> to vector<16x16xf32>
    %49 = arith.truncf %48 : vector<16x16xf32> to vector<16x16xbf16>
    %50 = vector.extract_strided_slice %45 {offsets = [0, 64], sizes = [16, 16], strides = [1, 1]} : vector<16x96xf32> to vector<16x16xf32>
    %51 = arith.truncf %50 : vector<16x16xf32> to vector<16x16xbf16>
    %cst_23 = arith.constant dense<0.000000e+00> : vector<16x16xf32>
    %52 = tpu.matmul %47, %49, %cst_23 {dimension_numbers = #tpu.dot_dimension_numbers<[1], [1], [0], [0], [0, 0, 1, 0], [], []>} : vector<16x16xbf16>, vector<16x16xbf16>, vector<16x16xf32> -> vector<16x16xf32>
    %53 = vector.broadcast %37 : vector<1x16xf32> to vector<16x16xf32>
    %54 = arith.addf %52, %53 : vector<16x16xf32>
    %cst_24 = arith.constant dense<0xFF800000> : vector<16xf32>
    %55 = vector.multi_reduction <maximumf>, %54, %cst_24 [1] : vector<16x16xf32> to vector<16xf32>
    %56 = vector.shape_cast %55 : vector<16xf32> to vector<16x1xf32>
    %57 = vector.broadcast %56 : vector<16x1xf32> to vector<16x16xf32>
    %58 = arith.subf %54, %57 : vector<16x16xf32>
    %59 = math.exp %58 : vector<16x16xf32>
    %cst_25 = arith.constant dense<0.000000e+00> : vector<16xf32>
    %60 = vector.multi_reduction <add>, %59, %cst_25 [1] : vector<16x16xf32> to vector<16xf32>
    %61 = vector.shape_cast %60 : vector<16xf32> to vector<16x1xf32>
    %62 = tpu.reciprocal %61 {approx = true} : vector<16x1xf32> -> vector<16x1xf32>
    %63 = vector.broadcast %62 : vector<16x1xf32> to vector<16x16xf32>
    %64 = arith.mulf %59, %63 : vector<16x16xf32>
    %65 = arith.truncf %64 : vector<16x16xf32> to vector<16x16xbf16>
    %cst_26 = arith.constant dense<0.000000e+00> : vector<16x16xf32>
    %66 = tpu.matmul %65, %51, %cst_26 {dimension_numbers = #tpu.dot_dimension_numbers<[1], [0], [0], [1], [0, 0, 1, 1], [], []>} : vector<16x16xbf16>, vector<16x16xbf16>, vector<16x16xf32> -> vector<16x16xf32>
    %67 = vector.extract_strided_slice %45 {offsets = [0, 16], sizes = [16, 16], strides = [1, 1]} : vector<16x96xf32> to vector<16x16xf32>
    %68 = arith.truncf %67 : vector<16x16xf32> to vector<16x16xbf16>
    %69 = vector.extract_strided_slice %45 {offsets = [0, 48], sizes = [16, 16], strides = [1, 1]} : vector<16x96xf32> to vector<16x16xf32>
    %70 = arith.truncf %69 : vector<16x16xf32> to vector<16x16xbf16>
    %71 = vector.extract_strided_slice %45 {offsets = [0, 80], sizes = [16, 16], strides = [1, 1]} : vector<16x96xf32> to vector<16x16xf32>
    %72 = arith.truncf %71 : vector<16x16xf32> to vector<16x16xbf16>
    %cst_27 = arith.constant dense<0.000000e+00> : vector<16x16xf32>
    %73 = tpu.matmul %68, %70, %cst_27 {dimension_numbers = #tpu.dot_dimension_numbers<[1], [1], [0], [0], [0, 0, 1, 0], [], []>} : vector<16x16xbf16>, vector<16x16xbf16>, vector<16x16xf32> -> vector<16x16xf32>
    %74 = vector.broadcast %37 : vector<1x16xf32> to vector<16x16xf32>
    %75 = arith.addf %73, %74 : vector<16x16xf32>
    %cst_28 = arith.constant dense<0xFF800000> : vector<16xf32>
    %76 = vector.multi_reduction <maximumf>, %75, %cst_28 [1] : vector<16x16xf32> to vector<16xf32>
    %77 = vector.shape_cast %76 : vector<16xf32> to vector<16x1xf32>
    %78 = vector.broadcast %77 : vector<16x1xf32> to vector<16x16xf32>
    %79 = arith.subf %75, %78 : vector<16x16xf32>
    %80 = math.exp %79 : vector<16x16xf32>
    %cst_29 = arith.constant dense<0.000000e+00> : vector<16xf32>
    %81 = vector.multi_reduction <add>, %80, %cst_29 [1] : vector<16x16xf32> to vector<16xf32>
    %82 = vector.shape_cast %81 : vector<16xf32> to vector<16x1xf32>
    %83 = tpu.reciprocal %82 {approx = true} : vector<16x1xf32> -> vector<16x1xf32>
    %84 = vector.broadcast %83 : vector<16x1xf32> to vector<16x16xf32>
    %85 = arith.mulf %80, %84 : vector<16x16xf32>
    %86 = arith.truncf %85 : vector<16x16xf32> to vector<16x16xbf16>
    %cst_30 = arith.constant dense<0.000000e+00> : vector<16x16xf32>
    %87 = tpu.matmul %86, %72, %cst_30 {dimension_numbers = #tpu.dot_dimension_numbers<[1], [0], [0], [1], [0, 0, 1, 1], [], []>} : vector<16x16xbf16>, vector<16x16xbf16>, vector<16x16xf32> -> vector<16x16xf32>
    %88 = tpu.concatenate %66, %87 in 1 : vector<16x16xf32>, vector<16x16xf32> -> vector<16x32xf32>
    %c0_31 = arith.constant 0 : index
    %c0_32 = arith.constant 0 : index
    %c0_33 = arith.constant 0 : index
    %89 = vector.load %arg12[%c0_31, %c0_32, %c0_33] : memref<2x8x128xf32, #tpu.memory_space<vmem>>, vector<1x8x128xf32>
    %90 = vector.shape_cast %89 : vector<1x8x128xf32> to vector<8x128xf32>
    %91 = vector.extract_strided_slice %90 {offsets = [0, 0], sizes = [1, 128], strides = [1, 1]} : vector<8x128xf32> to vector<1x128xf32>
    %92 = vector.extract_strided_slice %90 {offsets = [1, 0], sizes = [1, 128], strides = [1, 1]} : vector<8x128xf32> to vector<1x128xf32>
    %93 = vector.extract_strided_slice %90 {offsets = [2, 0], sizes = [1, 128], strides = [1, 1]} : vector<8x128xf32> to vector<1x128xf32>
    %94 = vector.extract_strided_slice %90 {offsets = [3, 0], sizes = [1, 128], strides = [1, 1]} : vector<8x128xf32> to vector<1x128xf32>
    %95 = vector.extract_strided_slice %90 {offsets = [4, 0], sizes = [1, 128], strides = [1, 1]} : vector<8x128xf32> to vector<1x128xf32>
    %96 = vector.extract_strided_slice %90 {offsets = [5, 0], sizes = [1, 128], strides = [1, 1]} : vector<8x128xf32> to vector<1x128xf32>
    %97 = arith.truncf %88 : vector<16x32xf32> to vector<16x32xbf16>
    %c0_34 = arith.constant 0 : index
    %c0_35 = arith.constant 0 : index
    %c0_36 = arith.constant 0 : index
    %98 = vector.load %arg8[%c0_34, %c0_35, %c0_36] : memref<2x32x128xbf16, #tpu.memory_space<vmem>>, vector<1x32x128xbf16>
    %99 = vector.shape_cast %98 : vector<1x32x128xbf16> to vector<32x128xbf16>
    %cst_37 = arith.constant dense<0.000000e+00> : vector<16x128xf32>
    %100 = tpu.matmul %97, %99, %cst_37 {dimension_numbers = #tpu.dot_dimension_numbers<[1], [0], [0], [1], [0, 0, 1, 1], [], []>} : vector<16x32xbf16>, vector<32x128xbf16>, vector<16x128xf32> -> vector<16x128xf32>
    %101 = vector.broadcast %91 : vector<1x128xf32> to vector<16x128xf32>
    %102 = arith.addf %100, %101 : vector<16x128xf32>
    %103 = arith.addf %35, %102 : vector<16x128xf32>
    %cst_38 = arith.constant dense<0.000000e+00> : vector<16xf32>
    %104 = vector.multi_reduction <add>, %103, %cst_38 [1] : vector<16x128xf32> to vector<16xf32>
    %105 = vector.shape_cast %104 : vector<16xf32> to vector<16x1xf32>
    %cst_39 = arith.constant 3.125000e-02 : f32
    %106 = vector.broadcast %cst_39 : f32 to vector<16x1xf32>
    %107 = arith.mulf %105, %106 : vector<16x1xf32>
    %108 = arith.mulf %103, %103 : vector<16x128xf32>
    %cst_40 = arith.constant dense<0.000000e+00> : vector<16xf32>
    %109 = vector.multi_reduction <add>, %108, %cst_40 [1] : vector<16x128xf32> to vector<16xf32>
    %110 = vector.shape_cast %109 : vector<16xf32> to vector<16x1xf32>
    %cst_41 = arith.constant 3.125000e-02 : f32
    %111 = vector.broadcast %cst_41 : f32 to vector<16x1xf32>
    %112 = arith.mulf %110, %111 : vector<16x1xf32>
    %113 = arith.mulf %107, %107 : vector<16x1xf32>
    %114 = arith.subf %112, %113 : vector<16x1xf32>
    %115 = vector.broadcast %107 : vector<16x1xf32> to vector<16x128xf32>
    %116 = arith.subf %103, %115 : vector<16x128xf32>
    %cst_42 = arith.constant 9.99999996E-13 : f32
    %117 = vector.broadcast %cst_42 : f32 to vector<16x1xf32>
    %118 = arith.addf %114, %117 : vector<16x1xf32>
    %119 = math.rsqrt %118 : vector<16x1xf32>
    %120 = vector.broadcast %119 : vector<16x1xf32> to vector<16x128xf32>
    %121 = arith.mulf %116, %120 : vector<16x128xf32>
    %122 = vector.broadcast %92 : vector<1x128xf32> to vector<16x128xf32>
    %123 = arith.mulf %121, %122 : vector<16x128xf32>
    %124 = vector.broadcast %93 : vector<1x128xf32> to vector<16x128xf32>
    %125 = arith.addf %123, %124 : vector<16x128xf32>
    %126 = arith.truncf %125 : vector<16x128xf32> to vector<16x128xbf16>
    %c0_43 = arith.constant 0 : index
    %c0_44 = arith.constant 0 : index
    %c0_45 = arith.constant 0 : index
    %127 = vector.load %arg9[%c0_43, %c0_44, %c0_45] : memref<2x128x128xbf16, #tpu.memory_space<vmem>>, vector<1x128x128xbf16>
    %128 = vector.shape_cast %127 : vector<1x128x128xbf16> to vector<128x128xbf16>
    %cst_46 = arith.constant dense<0.000000e+00> : vector<16x128xf32>
    %129 = tpu.matmul %126, %128, %cst_46 {dimension_numbers = #tpu.dot_dimension_numbers<[1], [0], [0], [1], [0, 0, 1, 1], [], []>} : vector<16x128xbf16>, vector<128x128xbf16>, vector<16x128xf32> -> vector<16x128xf32>
    %c0_47 = arith.constant 0 : index
    %c0_48 = arith.constant 0 : index
    %c0_49 = arith.constant 0 : index
    %130 = vector.load %arg10[%c0_47, %c0_48, %c0_49] : memref<2x1x128xf32, #tpu.memory_space<vmem>>, vector<1x1x128xf32>
    %131 = vector.shape_cast %130 : vector<1x1x128xf32> to vector<1x128xf32>
    %132 = vector.broadcast %131 : vector<1x128xf32> to vector<16x128xf32>
    %133 = arith.addf %129, %132 : vector<16x128xf32>
    %cst_50 = arith.constant 0.636619746 : f32
    %134 = math.sqrt %cst_50 : f32
    %cst_51 = arith.constant 5.000000e-01 : f32
    %135 = vector.broadcast %cst_51 : f32 to vector<16x128xf32>
    %136 = arith.mulf %135, %133 : vector<16x128xf32>
    %cst_52 = arith.constant 4.471500e-02 : f32
    %137 = vector.broadcast %cst_52 : f32 to vector<16x128xf32>
    %138 = arith.mulf %137, %133 : vector<16x128xf32>
    %139 = arith.mulf %138, %133 : vector<16x128xf32>
    %140 = arith.mulf %139, %133 : vector<16x128xf32>
    %141 = arith.addf %133, %140 : vector<16x128xf32>
    %142 = vector.broadcast %134 : f32 to vector<16x128xf32>
    %143 = arith.mulf %142, %141 : vector<16x128xf32>
    %144 = math.tanh %143 : vector<16x128xf32>
    %cst_53 = arith.constant 1.000000e+00 : f32
    %145 = vector.broadcast %cst_53 : f32 to vector<16x128xf32>
    %146 = arith.addf %145, %144 : vector<16x128xf32>
    %147 = arith.mulf %136, %146 : vector<16x128xf32>
    %148 = arith.truncf %147 : vector<16x128xf32> to vector<16x128xbf16>
    %c0_54 = arith.constant 0 : index
    %c0_55 = arith.constant 0 : index
    %c0_56 = arith.constant 0 : index
    %149 = vector.load %arg11[%c0_54, %c0_55, %c0_56] : memref<2x128x128xbf16, #tpu.memory_space<vmem>>, vector<1x128x128xbf16>
    %150 = vector.shape_cast %149 : vector<1x128x128xbf16> to vector<128x128xbf16>
    %cst_57 = arith.constant dense<0.000000e+00> : vector<16x128xf32>
    %151 = tpu.matmul %148, %150, %cst_57 {dimension_numbers = #tpu.dot_dimension_numbers<[1], [0], [0], [1], [0, 0, 1, 1], [], []>} : vector<16x128xbf16>, vector<128x128xbf16>, vector<16x128xf32> -> vector<16x128xf32>
    %152 = vector.broadcast %94 : vector<1x128xf32> to vector<16x128xf32>
    %153 = arith.addf %151, %152 : vector<16x128xf32>
    %154 = arith.addf %125, %153 : vector<16x128xf32>
    %cst_58 = arith.constant dense<0.000000e+00> : vector<16xf32>
    %155 = vector.multi_reduction <add>, %154, %cst_58 [1] : vector<16x128xf32> to vector<16xf32>
    %156 = vector.shape_cast %155 : vector<16xf32> to vector<16x1xf32>
    %cst_59 = arith.constant 3.125000e-02 : f32
    %157 = vector.broadcast %cst_59 : f32 to vector<16x1xf32>
    %158 = arith.mulf %156, %157 : vector<16x1xf32>
    %159 = arith.mulf %154, %154 : vector<16x128xf32>
    %cst_60 = arith.constant dense<0.000000e+00> : vector<16xf32>
    %160 = vector.multi_reduction <add>, %159, %cst_60 [1] : vector<16x128xf32> to vector<16xf32>
    %161 = vector.shape_cast %160 : vector<16xf32> to vector<16x1xf32>
    %cst_61 = arith.constant 3.125000e-02 : f32
    %162 = vector.broadcast %cst_61 : f32 to vector<16x1xf32>
    %163 = arith.mulf %161, %162 : vector<16x1xf32>
    %164 = arith.mulf %158, %158 : vector<16x1xf32>
    %165 = arith.subf %163, %164 : vector<16x1xf32>
    %166 = vector.broadcast %158 : vector<16x1xf32> to vector<16x128xf32>
    %167 = arith.subf %154, %166 : vector<16x128xf32>
    %cst_62 = arith.constant 9.99999996E-13 : f32
    %168 = vector.broadcast %cst_62 : f32 to vector<16x1xf32>
    %169 = arith.addf %165, %168 : vector<16x1xf32>
    %170 = math.rsqrt %169 : vector<16x1xf32>
    %171 = vector.broadcast %170 : vector<16x1xf32> to vector<16x128xf32>
    %172 = arith.mulf %167, %171 : vector<16x128xf32>
    %173 = vector.broadcast %95 : vector<1x128xf32> to vector<16x128xf32>
    %174 = arith.mulf %172, %173 : vector<16x128xf32>
    %175 = vector.broadcast %96 : vector<1x128xf32> to vector<16x128xf32>
    %176 = arith.addf %174, %175 : vector<16x128xf32>
    %177 = arith.truncf %176 : vector<16x128xf32> to vector<16x128xbf16>
    %c1 = arith.constant 1 : index
    %c0_63 = arith.constant 0 : index
    %c0_64 = arith.constant 0 : index
    %178 = vector.load %arg6[%c1, %c0_63, %c0_64] : memref<2x128x96xbf16, #tpu.memory_space<vmem>>, vector<1x128x96xbf16>
    %179 = vector.shape_cast %178 : vector<1x128x96xbf16> to vector<128x96xbf16>
    %cst_65 = arith.constant dense<0.000000e+00> : vector<16x96xf32>
    %180 = tpu.matmul %177, %179, %cst_65 {dimension_numbers = #tpu.dot_dimension_numbers<[1], [0], [0], [1], [0, 0, 1, 1], [], []>} : vector<16x128xbf16>, vector<128x96xbf16>, vector<16x96xf32> -> vector<16x96xf32>
    %c1_66 = arith.constant 1 : index
    %c0_67 = arith.constant 0 : index
    %c0_68 = arith.constant 0 : index
    %181 = vector.load %arg7[%c1_66, %c0_67, %c0_68] : memref<2x1x96xf32, #tpu.memory_space<vmem>>, vector<1x1x96xf32>
    %182 = vector.shape_cast %181 : vector<1x1x96xf32> to vector<1x96xf32>
    %183 = vector.broadcast %182 : vector<1x96xf32> to vector<16x96xf32>
    %184 = arith.addf %180, %183 : vector<16x96xf32>
    %185 = vector.extract_strided_slice %184 {offsets = [0, 0], sizes = [16, 16], strides = [1, 1]} : vector<16x96xf32> to vector<16x16xf32>
    %186 = arith.truncf %185 : vector<16x16xf32> to vector<16x16xbf16>
    %187 = vector.extract_strided_slice %184 {offsets = [0, 32], sizes = [16, 16], strides = [1, 1]} : vector<16x96xf32> to vector<16x16xf32>
    %188 = arith.truncf %187 : vector<16x16xf32> to vector<16x16xbf16>
    %189 = vector.extract_strided_slice %184 {offsets = [0, 64], sizes = [16, 16], strides = [1, 1]} : vector<16x96xf32> to vector<16x16xf32>
    %190 = arith.truncf %189 : vector<16x16xf32> to vector<16x16xbf16>
    %cst_69 = arith.constant dense<0.000000e+00> : vector<16x16xf32>
    %191 = tpu.matmul %186, %188, %cst_69 {dimension_numbers = #tpu.dot_dimension_numbers<[1], [1], [0], [0], [0, 0, 1, 0], [], []>} : vector<16x16xbf16>, vector<16x16xbf16>, vector<16x16xf32> -> vector<16x16xf32>
    %192 = vector.broadcast %37 : vector<1x16xf32> to vector<16x16xf32>
    %193 = arith.addf %191, %192 : vector<16x16xf32>
    %cst_70 = arith.constant dense<0xFF800000> : vector<16xf32>
    %194 = vector.multi_reduction <maximumf>, %193, %cst_70 [1] : vector<16x16xf32> to vector<16xf32>
    %195 = vector.shape_cast %194 : vector<16xf32> to vector<16x1xf32>
    %196 = vector.broadcast %195 : vector<16x1xf32> to vector<16x16xf32>
    %197 = arith.subf %193, %196 : vector<16x16xf32>
    %198 = math.exp %197 : vector<16x16xf32>
    %cst_71 = arith.constant dense<0.000000e+00> : vector<16xf32>
    %199 = vector.multi_reduction <add>, %198, %cst_71 [1] : vector<16x16xf32> to vector<16xf32>
    %200 = vector.shape_cast %199 : vector<16xf32> to vector<16x1xf32>
    %201 = tpu.reciprocal %200 {approx = true} : vector<16x1xf32> -> vector<16x1xf32>
    %202 = vector.broadcast %201 : vector<16x1xf32> to vector<16x16xf32>
    %203 = arith.mulf %198, %202 : vector<16x16xf32>
    %204 = arith.truncf %203 : vector<16x16xf32> to vector<16x16xbf16>
    %cst_72 = arith.constant dense<0.000000e+00> : vector<16x16xf32>
    %205 = tpu.matmul %204, %190, %cst_72 {dimension_numbers = #tpu.dot_dimension_numbers<[1], [0], [0], [1], [0, 0, 1, 1], [], []>} : vector<16x16xbf16>, vector<16x16xbf16>, vector<16x16xf32> -> vector<16x16xf32>
    %206 = vector.extract_strided_slice %184 {offsets = [0, 16], sizes = [16, 16], strides = [1, 1]} : vector<16x96xf32> to vector<16x16xf32>
    %207 = arith.truncf %206 : vector<16x16xf32> to vector<16x16xbf16>
    %208 = vector.extract_strided_slice %184 {offsets = [0, 48], sizes = [16, 16], strides = [1, 1]} : vector<16x96xf32> to vector<16x16xf32>
    %209 = arith.truncf %208 : vector<16x16xf32> to vector<16x16xbf16>
    %210 = vector.extract_strided_slice %184 {offsets = [0, 80], sizes = [16, 16], strides = [1, 1]} : vector<16x96xf32> to vector<16x16xf32>
    %211 = arith.truncf %210 : vector<16x16xf32> to vector<16x16xbf16>
    %cst_73 = arith.constant dense<0.000000e+00> : vector<16x16xf32>
    %212 = tpu.matmul %207, %209, %cst_73 {dimension_numbers = #tpu.dot_dimension_numbers<[1], [1], [0], [0], [0, 0, 1, 0], [], []>} : vector<16x16xbf16>, vector<16x16xbf16>, vector<16x16xf32> -> vector<16x16xf32>
    %213 = vector.broadcast %37 : vector<1x16xf32> to vector<16x16xf32>
    %214 = arith.addf %212, %213 : vector<16x16xf32>
    %cst_74 = arith.constant dense<0xFF800000> : vector<16xf32>
    %215 = vector.multi_reduction <maximumf>, %214, %cst_74 [1] : vector<16x16xf32> to vector<16xf32>
    %216 = vector.shape_cast %215 : vector<16xf32> to vector<16x1xf32>
    %217 = vector.broadcast %216 : vector<16x1xf32> to vector<16x16xf32>
    %218 = arith.subf %214, %217 : vector<16x16xf32>
    %219 = math.exp %218 : vector<16x16xf32>
    %cst_75 = arith.constant dense<0.000000e+00> : vector<16xf32>
    %220 = vector.multi_reduction <add>, %219, %cst_75 [1] : vector<16x16xf32> to vector<16xf32>
    %221 = vector.shape_cast %220 : vector<16xf32> to vector<16x1xf32>
    %222 = tpu.reciprocal %221 {approx = true} : vector<16x1xf32> -> vector<16x1xf32>
    %223 = vector.broadcast %222 : vector<16x1xf32> to vector<16x16xf32>
    %224 = arith.mulf %219, %223 : vector<16x16xf32>
    %225 = arith.truncf %224 : vector<16x16xf32> to vector<16x16xbf16>
    %cst_76 = arith.constant dense<0.000000e+00> : vector<16x16xf32>
    %226 = tpu.matmul %225, %211, %cst_76 {dimension_numbers = #tpu.dot_dimension_numbers<[1], [0], [0], [1], [0, 0, 1, 1], [], []>} : vector<16x16xbf16>, vector<16x16xbf16>, vector<16x16xf32> -> vector<16x16xf32>
    %227 = tpu.concatenate %205, %226 in 1 : vector<16x16xf32>, vector<16x16xf32> -> vector<16x32xf32>
    %c1_77 = arith.constant 1 : index
    %c0_78 = arith.constant 0 : index
    %c0_79 = arith.constant 0 : index
    %228 = vector.load %arg12[%c1_77, %c0_78, %c0_79] : memref<2x8x128xf32, #tpu.memory_space<vmem>>, vector<1x8x128xf32>
    %229 = vector.shape_cast %228 : vector<1x8x128xf32> to vector<8x128xf32>
    %230 = vector.extract_strided_slice %229 {offsets = [0, 0], sizes = [1, 128], strides = [1, 1]} : vector<8x128xf32> to vector<1x128xf32>
    %231 = vector.extract_strided_slice %229 {offsets = [1, 0], sizes = [1, 128], strides = [1, 1]} : vector<8x128xf32> to vector<1x128xf32>
    %232 = vector.extract_strided_slice %229 {offsets = [2, 0], sizes = [1, 128], strides = [1, 1]} : vector<8x128xf32> to vector<1x128xf32>
    %233 = vector.extract_strided_slice %229 {offsets = [3, 0], sizes = [1, 128], strides = [1, 1]} : vector<8x128xf32> to vector<1x128xf32>
    %234 = vector.extract_strided_slice %229 {offsets = [4, 0], sizes = [1, 128], strides = [1, 1]} : vector<8x128xf32> to vector<1x128xf32>
    %235 = vector.extract_strided_slice %229 {offsets = [5, 0], sizes = [1, 128], strides = [1, 1]} : vector<8x128xf32> to vector<1x128xf32>
    %236 = arith.truncf %227 : vector<16x32xf32> to vector<16x32xbf16>
    %c1_80 = arith.constant 1 : index
    %c0_81 = arith.constant 0 : index
    %c0_82 = arith.constant 0 : index
    %237 = vector.load %arg8[%c1_80, %c0_81, %c0_82] : memref<2x32x128xbf16, #tpu.memory_space<vmem>>, vector<1x32x128xbf16>
    %238 = vector.shape_cast %237 : vector<1x32x128xbf16> to vector<32x128xbf16>
    %cst_83 = arith.constant dense<0.000000e+00> : vector<16x128xf32>
    %239 = tpu.matmul %236, %238, %cst_83 {dimension_numbers = #tpu.dot_dimension_numbers<[1], [0], [0], [1], [0, 0, 1, 1], [], []>} : vector<16x32xbf16>, vector<32x128xbf16>, vector<16x128xf32> -> vector<16x128xf32>
    %240 = vector.broadcast %230 : vector<1x128xf32> to vector<16x128xf32>
    %241 = arith.addf %239, %240 : vector<16x128xf32>
    %242 = arith.addf %176, %241 : vector<16x128xf32>
    %cst_84 = arith.constant dense<0.000000e+00> : vector<16xf32>
    %243 = vector.multi_reduction <add>, %242, %cst_84 [1] : vector<16x128xf32> to vector<16xf32>
    %244 = vector.shape_cast %243 : vector<16xf32> to vector<16x1xf32>
    %cst_85 = arith.constant 3.125000e-02 : f32
    %245 = vector.broadcast %cst_85 : f32 to vector<16x1xf32>
    %246 = arith.mulf %244, %245 : vector<16x1xf32>
    %247 = arith.mulf %242, %242 : vector<16x128xf32>
    %cst_86 = arith.constant dense<0.000000e+00> : vector<16xf32>
    %248 = vector.multi_reduction <add>, %247, %cst_86 [1] : vector<16x128xf32> to vector<16xf32>
    %249 = vector.shape_cast %248 : vector<16xf32> to vector<16x1xf32>
    %cst_87 = arith.constant 3.125000e-02 : f32
    %250 = vector.broadcast %cst_87 : f32 to vector<16x1xf32>
    %251 = arith.mulf %249, %250 : vector<16x1xf32>
    %252 = arith.mulf %246, %246 : vector<16x1xf32>
    %253 = arith.subf %251, %252 : vector<16x1xf32>
    %254 = vector.broadcast %246 : vector<16x1xf32> to vector<16x128xf32>
    %255 = arith.subf %242, %254 : vector<16x128xf32>
    %cst_88 = arith.constant 9.99999996E-13 : f32
    %256 = vector.broadcast %cst_88 : f32 to vector<16x1xf32>
    %257 = arith.addf %253, %256 : vector<16x1xf32>
    %258 = math.rsqrt %257 : vector<16x1xf32>
    %259 = vector.broadcast %258 : vector<16x1xf32> to vector<16x128xf32>
    %260 = arith.mulf %255, %259 : vector<16x128xf32>
    %261 = vector.broadcast %231 : vector<1x128xf32> to vector<16x128xf32>
    %262 = arith.mulf %260, %261 : vector<16x128xf32>
    %263 = vector.broadcast %232 : vector<1x128xf32> to vector<16x128xf32>
    %264 = arith.addf %262, %263 : vector<16x128xf32>
    %265 = arith.truncf %264 : vector<16x128xf32> to vector<16x128xbf16>
    %c1_89 = arith.constant 1 : index
    %c0_90 = arith.constant 0 : index
    %c0_91 = arith.constant 0 : index
    %266 = vector.load %arg9[%c1_89, %c0_90, %c0_91] : memref<2x128x128xbf16, #tpu.memory_space<vmem>>, vector<1x128x128xbf16>
    %267 = vector.shape_cast %266 : vector<1x128x128xbf16> to vector<128x128xbf16>
    %cst_92 = arith.constant dense<0.000000e+00> : vector<16x128xf32>
    %268 = tpu.matmul %265, %267, %cst_92 {dimension_numbers = #tpu.dot_dimension_numbers<[1], [0], [0], [1], [0, 0, 1, 1], [], []>} : vector<16x128xbf16>, vector<128x128xbf16>, vector<16x128xf32> -> vector<16x128xf32>
    %c1_93 = arith.constant 1 : index
    %c0_94 = arith.constant 0 : index
    %c0_95 = arith.constant 0 : index
    %269 = vector.load %arg10[%c1_93, %c0_94, %c0_95] : memref<2x1x128xf32, #tpu.memory_space<vmem>>, vector<1x1x128xf32>
    %270 = vector.shape_cast %269 : vector<1x1x128xf32> to vector<1x128xf32>
    %271 = vector.broadcast %270 : vector<1x128xf32> to vector<16x128xf32>
    %272 = arith.addf %268, %271 : vector<16x128xf32>
    %cst_96 = arith.constant 0.636619746 : f32
    %273 = math.sqrt %cst_96 : f32
    %cst_97 = arith.constant 5.000000e-01 : f32
    %274 = vector.broadcast %cst_97 : f32 to vector<16x128xf32>
    %275 = arith.mulf %274, %272 : vector<16x128xf32>
    %cst_98 = arith.constant 4.471500e-02 : f32
    %276 = vector.broadcast %cst_98 : f32 to vector<16x128xf32>
    %277 = arith.mulf %276, %272 : vector<16x128xf32>
    %278 = arith.mulf %277, %272 : vector<16x128xf32>
    %279 = arith.mulf %278, %272 : vector<16x128xf32>
    %280 = arith.addf %272, %279 : vector<16x128xf32>
    %281 = vector.broadcast %273 : f32 to vector<16x128xf32>
    %282 = arith.mulf %281, %280 : vector<16x128xf32>
    %283 = math.tanh %282 : vector<16x128xf32>
    %cst_99 = arith.constant 1.000000e+00 : f32
    %284 = vector.broadcast %cst_99 : f32 to vector<16x128xf32>
    %285 = arith.addf %284, %283 : vector<16x128xf32>
    %286 = arith.mulf %275, %285 : vector<16x128xf32>
    %287 = arith.truncf %286 : vector<16x128xf32> to vector<16x128xbf16>
    %c1_100 = arith.constant 1 : index
    %c0_101 = arith.constant 0 : index
    %c0_102 = arith.constant 0 : index
    %288 = vector.load %arg11[%c1_100, %c0_101, %c0_102] : memref<2x128x128xbf16, #tpu.memory_space<vmem>>, vector<1x128x128xbf16>
    %289 = vector.shape_cast %288 : vector<1x128x128xbf16> to vector<128x128xbf16>
    %cst_103 = arith.constant dense<0.000000e+00> : vector<16x128xf32>
    %290 = tpu.matmul %287, %289, %cst_103 {dimension_numbers = #tpu.dot_dimension_numbers<[1], [0], [0], [1], [0, 0, 1, 1], [], []>} : vector<16x128xbf16>, vector<128x128xbf16>, vector<16x128xf32> -> vector<16x128xf32>
    %291 = vector.broadcast %233 : vector<1x128xf32> to vector<16x128xf32>
    %292 = arith.addf %290, %291 : vector<16x128xf32>
    %293 = arith.addf %264, %292 : vector<16x128xf32>
    %cst_104 = arith.constant dense<0.000000e+00> : vector<16xf32>
    %294 = vector.multi_reduction <add>, %293, %cst_104 [1] : vector<16x128xf32> to vector<16xf32>
    %295 = vector.shape_cast %294 : vector<16xf32> to vector<16x1xf32>
    %cst_105 = arith.constant 3.125000e-02 : f32
    %296 = vector.broadcast %cst_105 : f32 to vector<16x1xf32>
    %297 = arith.mulf %295, %296 : vector<16x1xf32>
    %298 = arith.mulf %293, %293 : vector<16x128xf32>
    %cst_106 = arith.constant dense<0.000000e+00> : vector<16xf32>
    %299 = vector.multi_reduction <add>, %298, %cst_106 [1] : vector<16x128xf32> to vector<16xf32>
    %300 = vector.shape_cast %299 : vector<16xf32> to vector<16x1xf32>
    %cst_107 = arith.constant 3.125000e-02 : f32
    %301 = vector.broadcast %cst_107 : f32 to vector<16x1xf32>
    %302 = arith.mulf %300, %301 : vector<16x1xf32>
    %303 = arith.mulf %297, %297 : vector<16x1xf32>
    %304 = arith.subf %302, %303 : vector<16x1xf32>
    %305 = vector.broadcast %297 : vector<16x1xf32> to vector<16x128xf32>
    %306 = arith.subf %293, %305 : vector<16x128xf32>
    %cst_108 = arith.constant 9.99999996E-13 : f32
    %307 = vector.broadcast %cst_108 : f32 to vector<16x1xf32>
    %308 = arith.addf %304, %307 : vector<16x1xf32>
    %309 = math.rsqrt %308 : vector<16x1xf32>
    %310 = vector.broadcast %309 : vector<16x1xf32> to vector<16x128xf32>
    %311 = arith.mulf %306, %310 : vector<16x128xf32>
    %312 = vector.broadcast %234 : vector<1x128xf32> to vector<16x128xf32>
    %313 = arith.mulf %311, %312 : vector<16x128xf32>
    %314 = vector.broadcast %235 : vector<1x128xf32> to vector<16x128xf32>
    %315 = arith.addf %313, %314 : vector<16x128xf32>
    %cst_109 = arith.constant dense<0.000000e+00> : vector<128xf32>
    %316 = vector.multi_reduction <add>, %315, %cst_109 [0] : vector<16x128xf32> to vector<128xf32>
    %317 = vector.shape_cast %316 : vector<128xf32> to vector<1x128xf32>
    %cst_110 = arith.constant 6.250000e-02 : f32
    %318 = vector.broadcast %cst_110 : f32 to vector<1x128xf32>
    %319 = arith.mulf %317, %318 : vector<1x128xf32>
    %320 = arith.truncf %319 : vector<1x128xf32> to vector<1x128xbf16>
    %c0_111 = arith.constant 0 : index
    %c0_112 = arith.constant 0 : index
    %321 = vector.load %arg13[%c0_111, %c0_112] : memref<128x128xbf16, #tpu.memory_space<vmem>>, vector<128x128xbf16>
    %cst_113 = arith.constant dense<0.000000e+00> : vector<1x128xf32>
    %322 = tpu.matmul %320, %321, %cst_113 {dimension_numbers = #tpu.dot_dimension_numbers<[1], [0], [0], [1], [0, 0, 1, 1], [], []>} : vector<1x128xbf16>, vector<128x128xbf16>, vector<1x128xf32> -> vector<1x128xf32>
    %c0_114 = arith.constant 0 : index
    %c0_115 = arith.constant 0 : index
    %323 = vector.load %arg14[%c0_114, %c0_115] : memref<1x128xf32, #tpu.memory_space<vmem>>, vector<1x128xf32>
    %324 = arith.addf %322, %323 : vector<1x128xf32>
    %c0_116 = arith.constant 0 : index
    %c0_117 = arith.constant 0 : index
    %c0_118 = arith.constant 0 : index
    %325 = vector.load %arg15[%c0_116, %c0_117, %c0_118] : memref<1x1x128xf32, #tpu.memory_space<vmem>>, vector<1x1x128xf32>
    %326 = vector.shape_cast %325 : vector<1x1x128xf32> to vector<1x128xf32>
    %327 = vector.shape_cast %324 : vector<1x128xf32> to vector<1x1x128xf32>
    tpu.vector_store %arg15[%c0_116, %c0_117, %c0_118], %327 {strides = array<i32>} : memref<1x1x128xf32, #tpu.memory_space<vmem>>, vector<1x1x128xf32>,
    return
  }
  func.func @transform_0(%arg0: i32) -> (i32, i32, i32) {
    %c0_i32 = arith.constant 0 : i32
    %c0_i32_0 = arith.constant 0 : i32
    %c0_i32_1 = arith.constant 0 : i32
    return %arg0, %c0_i32, %c0_i32_0 : i32, i32, i32
  }
  func.func @transform_1(%arg0: i32) -> (i32, i32, i32) {
    %c0_i32 = arith.constant 0 : i32
    %c0_i32_0 = arith.constant 0 : i32
    %c0_i32_1 = arith.constant 0 : i32
    return %arg0, %c0_i32, %c0_i32_0 : i32, i32, i32
  }
  func.func @transform_2(%arg0: i32) -> (i32, i32) {
    %c0_i32 = arith.constant 0 : i32
    %c0_i32_0 = arith.constant 0 : i32
    %c0_i32_1 = arith.constant 0 : i32
    return %c0_i32, %c0_i32_0 : i32, i32
  }
  func.func @transform_3(%arg0: i32) -> (i32, i32) {
    %c0_i32 = arith.constant 0 : i32
    %c0_i32_0 = arith.constant 0 : i32
    %c0_i32_1 = arith.constant 0 : i32
    return %c0_i32, %c0_i32_0 : i32, i32
  }
  func.func @transform_4(%arg0: i32) -> (i32, i32) {
    %c0_i32 = arith.constant 0 : i32
    %c0_i32_0 = arith.constant 0 : i32
    %c0_i32_1 = arith.constant 0 : i32
    return %c0_i32, %c0_i32_0 : i32, i32
  }
  func.func @transform_5(%arg0: i32) -> (i32, i32, i32) {
    %c0_i32 = arith.constant 0 : i32
    %c0_i32_0 = arith.constant 0 : i32
    %c0_i32_1 = arith.constant 0 : i32
    %c0_i32_2 = arith.constant 0 : i32
    return %c0_i32, %c0_i32_0, %c0_i32_1 : i32, i32, i32
  }
  func.func @transform_6(%arg0: i32) -> (i32, i32, i32) {
    %c0_i32 = arith.constant 0 : i32
    %c0_i32_0 = arith.constant 0 : i32
    %c0_i32_1 = arith.constant 0 : i32
    %c0_i32_2 = arith.constant 0 : i32
    return %c0_i32, %c0_i32_0, %c0_i32_1 : i32, i32, i32
  }
  func.func @transform_7(%arg0: i32) -> (i32, i32, i32) {
    %c0_i32 = arith.constant 0 : i32
    %c0_i32_0 = arith.constant 0 : i32
    %c0_i32_1 = arith.constant 0 : i32
    %c0_i32_2 = arith.constant 0 : i32
    return %c0_i32, %c0_i32_0, %c0_i32_1 : i32, i32, i32
  }
  func.func @transform_8(%arg0: i32) -> (i32, i32, i32) {
    %c0_i32 = arith.constant 0 : i32
    %c0_i32_0 = arith.constant 0 : i32
    %c0_i32_1 = arith.constant 0 : i32
    %c0_i32_2 = arith.constant 0 : i32
    return %c0_i32, %c0_i32_0, %c0_i32_1 : i32, i32, i32
  }
  func.func @transform_9(%arg0: i32) -> (i32, i32, i32) {
    %c0_i32 = arith.constant 0 : i32
    %c0_i32_0 = arith.constant 0 : i32
    %c0_i32_1 = arith.constant 0 : i32
    %c0_i32_2 = arith.constant 0 : i32
    return %c0_i32, %c0_i32_0, %c0_i32_1 : i32, i32, i32
  }
  func.func @transform_10(%arg0: i32) -> (i32, i32, i32) {
    %c0_i32 = arith.constant 0 : i32
    %c0_i32_0 = arith.constant 0 : i32
    %c0_i32_1 = arith.constant 0 : i32
    %c0_i32_2 = arith.constant 0 : i32
    return %c0_i32, %c0_i32_0, %c0_i32_1 : i32, i32, i32
  }
  func.func @transform_11(%arg0: i32) -> (i32, i32, i32) {
    %c0_i32 = arith.constant 0 : i32
    %c0_i32_0 = arith.constant 0 : i32
    %c0_i32_1 = arith.constant 0 : i32
    %c0_i32_2 = arith.constant 0 : i32
    return %c0_i32, %c0_i32_0, %c0_i32_1 : i32, i32, i32
  }
  func.func @transform_12(%arg0: i32) -> (i32, i32) {
    %c0_i32 = arith.constant 0 : i32
    %c0_i32_0 = arith.constant 0 : i32
    %c0_i32_1 = arith.constant 0 : i32
    return %c0_i32, %c0_i32_0 : i32, i32
  }
  func.func @transform_13(%arg0: i32) -> (i32, i32) {
    %c0_i32 = arith.constant 0 : i32
    %c0_i32_0 = arith.constant 0 : i32
    %c0_i32_1 = arith.constant 0 : i32
    return %c0_i32, %c0_i32_0 : i32, i32
  }
  func.func @transform_14(%arg0: i32) -> (i32, i32, i32) {
    %c0_i32 = arith.constant 0 : i32
    %c0_i32_0 = arith.constant 0 : i32
    %c0_i32_1 = arith.constant 0 : i32
    return %arg0, %c0_i32, %c0_i32_0 : i32, i32, i32
  }
}

</mosaic_0001>

<bundles_post_ra>
// kernel: tpu_custom_call.1
= control target key start
LH: loop header
LB: loop body
LE: loop exit
PB: predicated region body
PF: predicated region fallthrough
CT: control target
= control target key end

     0   :  { %s4289_s0 = inlined_call_operand.vmem [shape: s32[2,16,1], index: 0, kind: input, shape index: {}]   ;;  %s4290_s1 = inlined_call_operand.hbm [shape: f32[2,1,16], index: 1, kind: input, shape index: {}]   ;;  %s4291_s2 = inlined_call_operand.hbm [shape: f32[56,128], index: 2, kind: input, shape index: {}]   ;;  %s4292_s3 = inlined_call_operand.hbm [shape: f32[16,128], index: 3, kind: input, shape index: {}]   ;;  %s4293_s4 = inlined_call_operand.hbm [shape: f32[2,128], index: 4, kind: input, shape index: {}]   ;;  %s4294_s5 = inlined_call_operand.vmem [shape: bf16[2,128,96], index: 5, kind: input, shape index: {}]   ;;  %s4295_s6 = inlined_call_operand.vmem [shape: f32[2,1,96], index: 6, kind: input, shape index: {}]   ;;  %s4296_s7 = inlined_call_operand.hbm [shape: bf16[2,32,128], index: 7, kind: input, shape index: {}]   ;;  %s4297_s8 = inlined_call_operand.vmem [shape: bf16[2,128,128], index: 8, kind: input, shape index: {}]   ;;  %s4298_s9 = inlined_call_operand.vmem [shape: f32[2,1,128], index: 9, kind: input, shape index: {}]   ;;  %s4299_s10 = inlined_call_operand.vmem [shape: bf16[2,128,128], index: 10, kind: input, shape index: {}]   ;;  %s4300_s11 = inlined_call_operand.vmem [shape: f32[2,8,128], index: 11, kind: input, shape index: {}]   ;;  %s4301_s12 = inlined_call_operand.hbm [shape: bf16[128,128], index: 12, kind: input, shape index: {}]   ;;  %s4302_s13 = inlined_call_operand.vmem [shape: f32[1,128], index: 13, kind: input, shape index: {}]   ;;  %s4303_s14 = inlined_call_operand.hbm [shape: f32[2,1,128], index: 14, kind: output, shape index: {}]  }
   0x1   :  { %4318 = sst [smem:[#allocation19_spill]] %s4289_s0 }
   0x2   :  { %4319 = sst [smem:[#allocation20_spill]] %s4290_s1 }
   0x3   :  { %4320 = sst [smem:[#allocation21_spill]] %s4297_s8 }
   0x4   :  { %4321 = sst [smem:[#allocation22_spill]] %s4298_s9 }
   0x5   :  { %4322 = sst [smem:[#allocation23_spill]] %s4299_s10 }
   0x6   :  { %4323 = sst [smem:[#allocation24_spill]] %s4300_s11 }
   0x7   :  { %4324 = sst [smem:[#allocation25_spill]] %s4302_s13 }
   0x8   :  { %4325 = sst [smem:[#allocation26_spill]] %s4303_s14 }
   0x9   :  { %19 = vsyncpa [#allocation3], 0 }
   0xa   :  { %21 = vsyncpa [#allocation3 + $0x1], 0 }
   0xb   :  { %22 = vsyncpa [#allocation6], 0 }
   0xc   :  { %23 = vsyncpa [#allocation9], 0 }
   0xd   :  { %24 = vsyncpa [#allocation12], 0 }
   0xe   :  { %25 = vsyncpa [#allocation4], 0 }
   0xf   :  { %27 = vsyncpa [#allocation4 + $0x1], 0  ;;  %s3552_s29 = smov 0   ;;  %s3554_s30 = smov 0  }
  0x10   :  { %s3556_s15 = smov 0   ;;  %s3558_s16 = smov 0  }
  0x11 LB: > { %s3457_s17 = smov [#allocation5]   ;;  %s3573_s19 = sadd.s32 4294967295, %s3455_s16   ;;  %s3455_s16 = sphi %s3558_s16, %s4361_s16   ;;  %s3451_s15 = sphi %s3556_s15, %s4360_s15   ;;  %s3447_s30 = sphi %s3554_s30, %s4359_s30   ;;  %s3443_s29 = sphi %s3552_s29, %s4358_s29  }
  0x12   : > { %s380_s18 = sshll.u32 %s3457_s17, 4  ;;  %p2489_p0 = scmp.ge.s32.totalorder %s3455_s16, 1  ;;  %s3578_s18 = int_to_ptr.vmem [resolvable:$true] %s380_s18 }
  0x13   : > { %p4309_p1 = scmp.eq.s32.totalorder %s3573_s19, 0  ;;  %p368_p2 = scmp.lt.s32.totalorder %s3455_s16, 3 }
  0x14   : > { %s3458_s21 = smov [#allocation8]   ;;  %s3459_s24 = smov [#allocation7]  }
  0x15   : > { %p3580_p3 = pnand %p2489_p0, %p368_p2  ;;  %s407_s22 = sshll.u32 %s3458_s21, 4  ;;  %s3593_s22 = int_to_ptr.vmem [resolvable:$true] %s407_s22 }
  0x16   : > { %s393_s25 = sshll.u32 %s3459_s24, 4  ;;  %s3207_s28 = scalar_lea.hbm %s4291_s2, 896  ;;  %s3595_s25 = int_to_ptr.vmem [resolvable:$true] %s393_s25 }
  0x17   : > { %s4326_s20 = scalar_select %p3580_p3, 1, 0 }
  0x18   : > { %p2990_p5 = pneg %p3580_p3  ;;  %p3208_p7 = scmp.ne.s32.totalorder %s4291_s2, %s3207_s28 }
  0x19   : > { %p3214_p11 = scmp.lt.u32.totalorder %s3207_s28, %s4291_s2 }
  0x1a   : > { %p3589_p6 = pnand %p2990_p5, %p4309_p1 }
  0x1c   : > { %p3605_p8 = pneg %p3589_p6 }
  0x1e   : > { %p3210_p9 = pnand %p3605_p8, %p3208_p7 }
  0x20   : > { %p3211_p10 = pneg %p3210_p9 }
  0x22   : > { %p3216_p12 = pnand %p3214_p11, %p3211_p10 }
  0x24   : > { %3219 = shalt.err (!%p3216_p12)
}
  0x25   : > { %s3220_s14 = scalar_lea.vmem %s3578_s18, 896  ;;  %p3228_p5 = scmp.lt.s32.totalorder %s3578_s18, %s3578_s18 }
  0x26   : > { %p3221_p13 = scmp.ne.s32.totalorder %s3578_s18, %s3220_s14  ;;  %p3229_p4 = scmp.lt.s32.totalorder %s3220_s14, %s3220_s14 }
  0x28   : > { %p3223_p0 = pnand %p3221_p13, %p3605_p8  ;;  %p3230_p7 = por %p3229_p4, %p3228_p5 }
  0x2a   : > { %p3224_p2 = pneg %p3223_p0 }
  0x2c   : > { %p3231_p9 = pnand %p3230_p7, %p3224_p2 }
  0x2e   : > { %3234 = shalt.err (!%p3231_p9)
}
  0x2f   : > { %s3460_s26 = smov 128   ;;  %s3461_s13 = smov 8  }
  0x30   : > { %2993 = dma.hbm_to_vmem [thread:$0]  (!%p3589_p6), %s4291_s2, 896, %s3578_s18, [#allocation6], %s3460_s26, %s3460_s26, %s3461_s13  }
  0x31   : > { %s3235_s14 = scalar_lea.hbm %s4293_s4, 32 }
  0x32   : > { %p3236_p4 = scmp.ne.s32.totalorder %s4293_s4, %s3235_s14  ;;  %p3242_p12 = scmp.lt.u32.totalorder %s3235_s14, %s4293_s4 }
  0x34   : > { %p3238_p10 = pnand %p3236_p4, %p3605_p8 }
  0x36   : > { %p3239_p11 = pneg %p3238_p10 }
  0x38   : > { %p3244_p13 = pnand %p3242_p12, %p3239_p11 }
  0x3a   : > { %3247 = shalt.err (!%p3244_p13)
}
  0x3b   : > { %s3248_s18 = scalar_lea.vmem %s3593_s22, 32  ;;  %p3256_p7 = scmp.lt.s32.totalorder %s3593_s22, %s3593_s22 }
  0x3c   : > { %p3249_p0 = scmp.ne.s32.totalorder %s3593_s22, %s3248_s18  ;;  %p3257_p9 = scmp.lt.s32.totalorder %s3248_s18, %s3248_s18 }
  0x3e   : > { %p3251_p2 = pnand %p3249_p0, %p3605_p8  ;;  %p3258_p4 = por %p3257_p9, %p3256_p7 }
  0x40   : > { %p3252_p5 = pneg %p3251_p2 }
  0x42   : > { %p3259_p10 = pnand %p3258_p4, %p3252_p5 }
  0x44   : > { %3262 = shalt.err (!%p3259_p10)
}
  0x45   : > { %2999 = dma.hbm_to_vmem [thread:$0]  (!%p3589_p6), %s4293_s4, 32, %s3593_s22, [#allocation9]  }
  0x46   : > { %s3263_s27 = scalar_lea.hbm %s4292_s3, 256 }
  0x47   : > { %p3264_p11 = scmp.ne.s32.totalorder %s4292_s3, %s3263_s27  ;;  %p3270_p0 = scmp.lt.u32.totalorder %s3263_s27, %s4292_s3 }
  0x49   : > { %p3266_p12 = pnand %p3264_p11, %p3605_p8 }
  0x4b   : > { %p3267_p13 = pneg %p3266_p12 }
  0x4d   : > { %p3272_p2 = pnand %p3270_p0, %p3267_p13 }
  0x4f   : > { %3275 = shalt.err (!%p3272_p2)
}
  0x50   : > { %s3276_s22 = scalar_lea.vmem %s3595_s25, 256  ;;  %p3284_p4 = scmp.lt.s32.totalorder %s3595_s25, %s3595_s25 }
  0x51   : > { %p3277_p5 = scmp.ne.s32.totalorder %s3595_s25, %s3276_s22  ;;  %p3285_p10 = scmp.lt.s32.totalorder %s3276_s22, %s3276_s22 }
  0x53   : > { %p3279_p7 = pnand %p3277_p5, %p3605_p8  ;;  %p3286_p11 = por %p3285_p10, %p3284_p4 }
  0x55   : > { %p3280_p9 = pneg %p3279_p7 }
  0x57   : > { %p3287_p12 = pnand %p3286_p11, %p3280_p9 }
  0x59   : > { %3290 = shalt.err (!%p3287_p12)
}
  0x5a   : > { %2996 = dma.hbm_to_vmem [thread:$0]  (!%p3589_p6), %s4292_s3, 256, %s3595_s25, [#allocation6], %s3460_s26, %s3460_s26, %s3461_s13  }
  0x5b   : > { %s3462_s9 = smov [#allocation10]   ;;  %s3291_s28 = scalar_lea.hbm %s4296_s7, 512 }
  0x5c   : > { %s423_s10 = sshll.u32 %s3462_s9, 4  ;;  %p3292_p13 = scmp.ne.s32.totalorder %s4296_s7, %s3291_s28  ;;  %s424_s10 = int_to_ptr.vmem [resolvable:$true] %s423_s10 }
  0x5d   : > { %p3298_p5 = scmp.lt.u32.totalorder %s3291_s28, %s4296_s7 }
  0x5e   : > { %p3294_p0 = pnand %p3292_p13, %p3605_p8 }
  0x60   : > { %p3295_p2 = pneg %p3294_p0 }
  0x62   : > { %p3300_p7 = pnand %p3298_p5, %p3295_p2 }
  0x64   : > { %3303 = shalt.err (!%p3300_p7)
}
  0x65   : > { %s3304_s25 = scalar_lea.vmem %s424_s10, 512  ;;  %p3312_p11 = scmp.lt.s32.totalorder %s424_s10, %s424_s10 }
  0x66   : > { %p3305_p9 = scmp.ne.s32.totalorder %s424_s10, %s3304_s25  ;;  %p3313_p12 = scmp.lt.s32.totalorder %s3304_s25, %s3304_s25 }
  0x68   : > { %p3307_p4 = pnand %p3305_p9, %p3605_p8  ;;  %p3314_p1 = por %p3313_p12, %p3312_p11 }
  0x6a   : > { %p3308_p10 = pneg %p3307_p4 }
  0x6c   : > { %p3315_p3 = pnand %p3314_p1, %p3308_p10 }
  0x6e   : > { %3318 = shalt.err (!%p3315_p3)
}
  0x6f   : > { %s3463_s26 = smov 64   ;;  %s3464_s13 = smov 4  }
  0x70   : > { %3002 = dma.hbm_to_vmem [thread:$0]  (!%p3589_p6), %s4296_s7, 512, %s424_s10, [#allocation9], %s3463_s26, %s3463_s26, %s3464_s13  }
  0x71   : > { %s3465_s9 = smov [#allocation11]   ;;  %s3319_s17 = scalar_lea.hbm %s4301_s12, 1024 }
  0x72   : > { %s448_s11 = sshll.u32 %s3465_s9, 4  ;;  %p3320_p1 = scmp.ne.s32.totalorder %s4301_s12, %s3319_s17  ;;  %s449_s11 = int_to_ptr.vmem [resolvable:$true] %s448_s11 }
  0x73   : > { %p3326_p0 = scmp.lt.u32.totalorder %s3319_s17, %s4301_s12 }
  0x74   : > { %p3322_p3 = pnand %p3320_p1, %p3605_p8 }
  0x76   : > { %p3323_p13 = pneg %p3322_p3 }
  0x78   : > { %p3328_p2 = pnand %p3326_p0, %p3323_p13 }
  0x7a   : > { %3331 = shalt.err (!%p3328_p2)
}
  0x7b   : > { %s3332_s10 = scalar_lea.vmem %s449_s11, 1024  ;;  %p3340_p4 = scmp.lt.s32.totalorder %s449_s11, %s449_s11 }
  0x7c   : > { %p3333_p5 = scmp.ne.s32.totalorder %s449_s11, %s3332_s10  ;;  %p3341_p10 = scmp.lt.s32.totalorder %s3332_s10, %s3332_s10 }
  0x7e   : > { %p3335_p7 = pnand %p3333_p5, %p3605_p8  ;;  %p3342_p11 = por %p3341_p10, %p3340_p4 }
  0x80   : > { %p3336_p9 = pneg %p3335_p7 }
  0x82   : > { %p3343_p12 = pnand %p3342_p11, %p3336_p9 }
  0x84   : > { %3346 = shalt.err (!%p3343_p12)
}
  0x85   : > { %3005 = dma.hbm_to_vmem [thread:$0]  (!%p3589_p6), %s4301_s12, 1024, %s449_s11, [#allocation12], %s3463_s26, %s3463_s26, %s3464_s13  }
  0x86   : > { %s2488_s21 = sadd.s32 4294967294, %s3455_s16   ;;  %s3716_s23 = sadd.s32 1, %s3455_s16  }
  0x87   : > { %s66_s9 = sadd.s32 1, %s3451_s15  ;;  %s63_s27 = ssub.s32 %s3455_s16, %s3716_s23 }
  0x88   : > { %p73_p8 = scmp.ne.s32.totalorder %s3451_s15, %s3447_s30  ;;  %p64_p1 = scmp.eq.s32.totalorder %s63_s27, 0 }
  0x89   : > { %p74_p3 = scmp.eq.s32.totalorder %s3455_s16, 0  ;;  %p79_p13 = scmp.ne.s32.totalorder %s3447_s30, %s3443_s29 }
  0x8a   : > { %p355_p0 = scmp.eq.s32.totalorder %s3573_s19, 1  ;;  %p4329_p5 = scmp.eq.s32.totalorder %s3573_s19, 0 }
  0x8b   : > { %s3728_s28 = scalar_select %p64_p1, %s3451_s15, %s66_s9  }
  0x8c   : > { %p75_p2 = por %p74_p3, %p73_p8  ;;  %p3732_p7 = por %p4329_p5, %p79_p13 }
  0x8d   : > { %p3736_p6 = por %p355_p0, %p73_p8  ;;  %p361_p9 = scmp.eq.s32.totalorder %s2488_s21, 1 }
  0x8e   : > { %p3019_p4 = scmp.lt.s32.totalorder %s3455_s16, 2  ;;  %s473_s13 = sand.u32 1, %s3451_s15  }
  0x8f   : > { %s4331_s26 = scalar_select %p3736_p6, 1, 0 }
  0x90   : > { %p3742_p10 = por %p361_p9, %p79_p13  ;;  %s2496_s24 = sshll.u32 %s3455_s16, 4 }
  0x91   : > { %s4333_s1 = sld [smem:[#allocation20_spill]]  ;;  %s476_s10 = scalar_lea.vmem [#allocation2], %s473_s13 }
  0x92   : > { %s4332_s11 = scalar_select %p3742_p10, 1, 0 }
  0x93   : > { %s483_s18 = sshll.u32 %s476_s10, 4  ;;  %p3754_p11 = pnand %p3019_p4, %p75_p2  ;;  %s3752_s18 = int_to_ptr.vmem [resolvable:$true] %s483_s18 }
  0x94   : > { %s474_s21 = scalar_lea.sflag [#allocation3], %s473_s13 }
  0x95   : > { %p3349_p8 = pneg %p3754_p11 }
  0x97   : > { %s3750_s25 = scalar_lea.hbm %s4333_s1, %s2496_s24  ;;  %s3352_s14 = scalar_lea.hbm %s4333_s1, 32 }
  0x98   : > { %s3347_s9 = scalar_lea.hbm %s3750_s25, 16  ;;  %p3353_p13 = scmp.lt.u32.totalorder %s3750_s25, %s4333_s1 }
  0x99   : > { %p3348_p12 = scmp.ne.s32.totalorder %s3750_s25, %s3347_s9  ;;  %p3354_p0 = scmp.lt.u32.totalorder %s3352_s14, %s3347_s9 }
  0x9a   : > { %p3356_p5 = scmp.lt.u32.totalorder %s3347_s9, %s3750_s25 }
  0x9b   : > { %p3350_p1 = pnand %p3349_p8, %p3348_p12  ;;  %p3355_p2 = por %p3354_p0, %p3353_p13 }
  0x9d   : > { %p3351_p3 = pneg %p3350_p1  ;;  %p3357_p9 = por %p3356_p5, %p3355_p2 }
  0x9f   : > { %p3358_p4 = pnand %p3357_p9, %p3351_p3 }
  0xa1   : > { %3361 = shalt.err (!%p3358_p4)
}
  0xa2   : > { %s3362_s13 = scalar_lea.vmem %s3752_s18, 16  ;;  %s3466_s27 = smov [#allocation2]  }
  0xa3   : > { %p3363_p12 = scmp.ne.s32.totalorder %s3752_s18, %s3362_s13  ;;  %s3367_s24 = sshll.u32 %s3466_s27, 4  ;;  %s3368_s24 = int_to_ptr.vmem [resolvable:$false] %s3367_s24 }
  0xa4   : > { %s3369_s22 = scalar_lea.vmem %s3368_s24, 32  ;;  %p3370_p6 = scmp.lt.s32.totalorder %s3752_s18, %s3368_s24 }
  0xa5   : > { %p3365_p1 = pnand %p3363_p12, %p3349_p8  ;;  %p3371_p13 = scmp.lt.s32.totalorder %s3369_s22, %s3362_s13 }
  0xa7   : > { %p3366_p10 = pneg %p3365_p1  ;;  %p3372_p0 = por %p3371_p13, %p3370_p6 }
  0xa9   : > { %p3373_p2 = pnand %p3372_p0, %p3366_p10 }
  0xab   : > { %3376 = shalt.err (!%p3373_p2)
}
  0xac   : > { %3009 = dma.hbm_to_vmem [thread:$0]  (!%p3754_p11), %s3750_s25, 16, %s3752_s18, %s474_s21  }
  0xad   : > { %p4335_p3 = scmp.ne.s32.totalorder %s4326_s20, 0 }
  0xae   : > { %s3786_s9 = sand.u32 (!%p4335_p3), 1, %s3447_s30  }
  0xaf   : > { %492 = sbr.rel (%p4335_p3) target bundleno = 6515 (0x1973), region = 76  ;;  %s495_s14 = scalar_lea.sflag (!%p4335_p3), [#allocation3], %s3786_s9 }
  0xb0   : > { %s497_s10 = scalar_lea.vmem (!%p4335_p3), [#allocation2], %s3786_s9 }
  0xb6   : > { %3422 = dma.done.wait (%p3732_p7), %s495_s14, 16  }
  0xb7   : > { %3424 = vsyncadd (%p3732_p7), %s495_s14, 4294967280  ;;  %p4336_p6 = scmp.eq.s32.totalorder %s3573_s19, 0 }
  0xb9   : > { %3426 = dma.done.wait (%p4336_p6), [#allocation6], 1152   ;;  %p4337_p10 = pmov %p4336_p6 }
  0xba   : > { %p4338_p11 = pmov %p4336_p6 }
  0xbb   : > { %3428 = vsyncadd (%p4337_p10), [#allocation6], 4294966144 }
  0xbc   : > { %3430 = dma.done.wait (%p4338_p11), [#allocation9], 544   ;;  %p4339_p8 = pmov %p4336_p6 }
  0xbd   : > { %p4340_p5 = pmov %p4336_p6 }
  0xbe   : > { %3432 = vsyncadd (%p4339_p8), [#allocation9], 4294966752 }
  0xbf   : > { %3434 = dma.done.wait (%p4340_p5), [#allocation12], 1024   ;;  %p4341_p9 = pmov %p4340_p5 }
  0xc0   : > { %p565_p7 = scmp.lt.s32.totalorder %s3573_s19, 1  ;;  %v3467_v0 = vmov 0   ;;  %s4342_s0 = sld [smem:[#allocation19_spill]]  ;;  %v587_v3 = vld [vmem:[#allocation5] sm:$0xff]  ;;  %v588_v4 = vld [vmem:[#allocation5 + $0x8] sm:$0xff]  ;;  %v589_v5 = vld [vmem:[#allocation5 + $0x10] sm:$0xff]  ;;  %v573_v14 = vlaneseq }
  0xc1   : > { %3436 = vsyncadd (%p4341_p9), [#allocation12], 4294966272  ;;  %3076 = vset.pattern.permute.xlu0 %v3467_v0  ;;  %v590_v6 = vld [vmem:[#allocation5 + $0x18] sm:$0xff]  ;;  %v2954_v7 = vpack.c.bf16 %v588_v4, %v587_v3  ;;  %v591_v9 = vld [vmem:[#allocation5 + $0x20] sm:$0xff]  ;;  %v3468_v11 = vmov 0.0   ;;  %vm596_vm0 = vcmask 457728  }
  0xc2   : > { %s566_s20 = scalar_select %p565_p7, %s3573_s19, 1  ;;  %v2958_v8 = vpack.c.bf16 %v590_v6, %v589_v5  ;;  %v592_v10 = vld [vmem:[#allocation5 + $0x28] sm:$0xff]  ;;  %2770 = vmatprep.subr.bf16.mxu0 %v3468_v11  ;;  %v593_v13 = vld [vmem:[#allocation5 + $0x30] sm:$0xff]  ;;  %v574_v15 = vand.u32 127, %v573_v14  ;;  %v595_v20 = vld [vmem:[#allocation7 + $0x8] sm:$0xff]  ;;  %vm3469_vm3 = vmmov 0  }
  0xc3   : > { %2955 = vmatprep.subr.bf16.mxu1 %v2954_v7  ;;  %v2962_v12 = vpack.c.bf16 %v592_v10, %v591_v9  ;;  %v594_v21 = vld [vmem:[#allocation7] sm:$0xff]  ;;  %v3088_v29 = vld [vmem:[%s4294_s5 + $0x8] sm:$0xff]   ;;  %v3089_v30 = vld [vmem:[%s4294_s5 + $0x10] sm:$0xff]   ;;  %2772 = vmatprep.mubr.msk.bf16.mxu0 %vm3469_vm3, %v3468_v11  ;;  %v3858_v50 = vshrl.u32 %v573_v14, 7  ;;  %vm841_vm4 = vcmask 130048   ;;  %s4316_s25 = smov 80  }
  0xc4   : > { %s2638_s17 = sshll.u32 %s566_s20, 4  ;;  %2957 = vmatpush3.bf16.msra.mxu1 %v2954_v7  ;;  %v3087_v28 = vld [vmem:[%s4294_s5] sm:$0xff]   ;;  %v3090_v31 = vld [vmem:[%s4294_s5 + $0x18] sm:$0xff]   ;;  %v3092_v33 = vld [vmem:[%s4294_s5 + $0x28] sm:$0xff]   ;;  %s4315_s18 = smov 112   ;;  %vm1112_vm5 = vcmask 261120  }
  0xc5   : > { %2959 = vmatprep.subr.bf16.mxu1 %v2958_v8  ;;  %v3091_v32 = vld [vmem:[%s4294_s5 + $0x20] sm:$0xff]   ;;  %v3093_v34 = vld [vmem:[%s4294_s5 + $0x30] sm:$0xff]   ;;  %v3094_v35 = vld [vmem:[%s4294_s5 + $0x38] sm:$0xff]   ;;  %v3861_v51 = vsub.s32 0, %v3858_v50  ;;  %v3865_v54 = vsub.s32 1, %v3858_v50  ;;  %s4312_s21 = smov 16  }
  0xc6   : > { %s569_s8 = scalar_lea.vmem %s4342_s0, %s2638_s17  ;;  %v678_v52 = vld [vmem:[#allocation8] sm:$0x3]  ;;  %v2509_v3 = vld [vmem:[%s4295_s6] ss:$0 sm:$0xff]  ;;  %s4317_s17 = smov 96  }
  0xc7   : > { %v571_v1 = vld [vmem:[%s569_s8] sm:$0xff]  ;;  %v572_v2 = vld [vmem:[%s569_s8 + $0x8] sm:$0xff]  ;;  %v708_v53 = vrot.slane %v678_v52, %v3861_v51  ;;  %v714_v60 = vrot.slane %v678_v52, %v3865_v54  ;;  %s4313_s8 = smov 48   ;;  %s4343_s24 = sld [smem:[#allocation24_spill]] }
  0xc8   : > { %576 = vperm.xlu0 %3076, %v571_v1   ;;  %2961 = vmatpush3.bf16.msra.mxu1 %v2958_v8  ;;  %v3892_v14 = vld [vmem:[%s497_s10] ss:$0 sm:$0xff]  ;;  %s4314_s10 = smov 64   ;;  %s4344_s20 = sld [smem:[#allocation21_spill]] }
  0xc9   : > { %2963 = vmatprep.subr.bf16.mxu1 %v2962_v12  ;;  %s4345_s13 = sld [smem:[#allocation23_spill]]  ;;  %s4346_s27 = sld [smem:[#allocation22_spill]] }
  0xca   : > { %s4349_s22 = smov 112   ;;  %s4351_s14 = smov 48  }
  0xcb   : > { %s4354_s0 = sld [smem:[#allocation26_spill]]  ;;  %p4355_p12 = scmp.ne.s32.totalorder %s4331_s26, 0 }
  0xcc   : > { %579 = vperm.xlu0 %3076, %v572_v2   ;;  %2965 = vmatpush3.bf16.msra.mxu1 %v2962_v12 }
  0xcd   : > { %2745 = vmatprep.subr.mxu1 %v593_v13 }
  0xd0   : > { %2746 = vmatpush3.msra.mxu1 %v593_v13 }
  0xd1   : > { %2750 = vmatprep.subr.bf16.mxu1 %v3468_v11 }
 0x147   : > { %v577_v16 = vpop.permute.xlu0 %576 }
 0x148   : > { %vm581_vm1 = vcmp.eq.s32.totalorder %v577_v16, %v574_v15 }
 0x149   : > { %v2505_v17 = vsel %vm581_vm1, 1.0, %v3468_v11 }
 0x14a   : > { %2747 = vmatprep.mubr.msk.f32.mxu1 %vm596_vm0, %v2505_v17 }
 0x14b   : > { %v580_v18 = vpop.permute.xlu0 %579 }
 0x14c   : > { %vm582_vm2 = vcmp.eq.s32.totalorder %v580_v18, %v574_v15 }
 0x14d   : > { %v2506_v19 = vsel %vm582_vm2, 1.0, %v3468_v11 }
 0x14e   : > { %2748 = vmatmul.mubr.msk.f32.vlgmr.msra.gmra.mrb[0].mxu1 %vm596_vm0, %v2506_v19 }
 0x14f   : > { %2751 = vmatpush3.bf16.msra.mxu1 %v3087_v28  ;;  %2766 = vmatprep.mubr.msk.bf16.mxu1 %vm3469_vm3, %v3468_v11 }
 0x150   : > { %2752 = vmatprep.subr.bf16.mxu1 %v3468_v11 }
 0x153   : > { %2753 = vmatpush3.bf16.msra.mxu1 %v3088_v29 }
 0x154   : > { %2754 = vmatprep.subr.bf16.mxu1 %v3468_v11 }
 0x157   : > { %2755 = vmatpush3.bf16.msra.mxu1 %v3089_v30 }
 0x158   : > { %2756 = vmatprep.subr.bf16.mxu1 %v3468_v11 }
 0x15b   : > { %2757 = vmatpush3.bf16.msra.mxu1 %v3090_v31 }
 0x15c   : > { %2758 = vmatprep.subr.bf16.mxu1 %v3468_v11 }
 0x15f   : > { %2759 = vmatpush3.bf16.msra.mxu1 %v3091_v32 }
 0x160   : > { %2760 = vmatprep.subr.bf16.mxu1 %v3468_v11 }
 0x163   : > { %2761 = vmatpush3.bf16.msra.mxu1 %v3092_v33 }
 0x164   : > { %2762 = vmatprep.subr.bf16.mxu1 %v3468_v11 }
 0x167   : > { %2763 = vmatpush3.bf16.msra.mxu1 %v3093_v34 }
 0x168   : > { %2764 = vmatprep.subr.bf16.mxu1 %v3468_v11 }
 0x16b   : > { %2765 = vmatpush3.bf16.msra.mxu1 %v3094_v35 }
 0x16c   : > { %2788 = vmatprep.subr.bf16.mxu1 %v3468_v11 }
 0x221   : > { %v2749_v22 = vpop.f32.mrb[0].mxu1 }
 0x222   : > { %v3816_v23 = vadd.f32 %v2749_v22, %v595_v20  ;;  %v669_v24 = vpop.f32.mrb[1].mxu1 }
 0x223   : > { %v670_v25 = vadd.f32 %v669_v24, %v594_v21 }
 0x224   : > { %681 = vadd.xlane.f32.xlu1 %v3816_v23  ;;  %v686_v27 = vmul.f32 %v3816_v23, %v3816_v23 }
 0x225   : > { %v685_v26 = vmul.f32 %v670_v25, %v670_v25 }
 0x227   : > { %687 = vadd.xlane.f32.xlu0 %v685_v26 }
 0x228   : > { %679 = vadd.xlane.f32.xlu1 %v670_v25 }
 0x22c   : > { %689 = vadd.xlane.f32.xlu1 %v686_v27 }
 0x2b1   : > { %v682_v36 = vpop.xlane.xlu1 %681 }
 0x2b2   : > { %v684_v39 = vmul.f32 0.03125, %v682_v36 }
 0x2b4   : > { %v688_v37 = vpop.xlane.xlu0 %687  ;;  %v694_v44 = vmul.f32 %v684_v39, %v684_v39  ;;  %v698_v57 = vsub.f32 %v3816_v23, %v684_v39 }
 0x2b5   : > { %v680_v38 = vpop.xlane.xlu1 %679  ;;  %v691_v41 = vmul.f32 0.03125, %v688_v37 }
 0x2b6   : > { %v683_v40 = vmul.f32 0.03125, %v680_v38 }
 0x2b8   : > { %v693_v42 = vmul.f32 %v683_v40, %v683_v40  ;;  %v697_v55 = vsub.f32 %v670_v25, %v683_v40 }
 0x2b9   : > { %v690_v43 = vpop.xlane.xlu1 %689 }
 0x2ba   : > { %v695_v45 = vsub.f32 %v691_v41, %v693_v42  ;;  %v692_v46 = vmul.f32 0.03125, %v690_v43 }
 0x2bc   : > { %v699_v47 = vadd.f32 1e-12, %v695_v45  ;;  %v696_v48 = vsub.f32 %v692_v46, %v694_v44 }
 0x2be   : > { %3147 = vrsqrt.f32 %v699_v47  ;;  %v700_v49 = vadd.f32 1e-12, %v696_v48 }
 0x2c0   : > { %3149 = vrsqrt.f32 %v700_v49 }
 0x2c8   : > { %v3148_v56 = vpop.eup %3147 }
 0x2c9   : > { %v703_v58 = vmul.f32 %v3148_v56, %v697_v55 }
 0x2ca   : > { %v3150_v59 = vpop.eup %3149 }
 0x2cb   : > { %v709_v61 = vmul.f32 %v708_v53, %v703_v58  ;;  %v704_v62 = vmul.f32 %v3150_v59, %v698_v57 }
 0x2cd   : > { %v710_v63 = vmul.f32 %v708_v53, %v704_v62  ;;  %v3869_v0 = vadd.f32 %v714_v60, %v709_v61 }
 0x2cf   : > { %v3871_v1 = vadd.f32 %v714_v60, %v710_v63 }
 0x2d1   : > { %v718_v2 = vpack.c.bf16 %v3871_v1, %v3869_v0 }
 0x2d3   : > { %2767 = vmatmul.mubr.bf16.vlgmr.msra.gmra.mrb[4].mxu1 %v718_v2 }
 0x2d4   : > { %2790 = vmatprep.mubr.msk.bf16.mxu1 %vm3469_vm3, %v3468_v11 }
 0x3a6   : > { %v824_v4 = vpop.f32.mrb[4].mxu1 }
 0x3a7   : > { %v2768_v5 = vpop.f32.mrb[5].mxu1  ;;  %v825_v7 = vadd.f32 %v2509_v3, %v824_v4 }
 0x3a8   : > { %v827_v6 = vpop.f32.mrb[6].mxu1 }
 0x3a9   : > { %v828_v8 = vadd.f32 %v2509_v3, %v827_v6  ;;  %v2769_v9 = vpop.f32.mrb[7].mxu1 }
 0x3ab   : > { %v3880_v10 = vpack.c.bf16 %v828_v8, %v825_v7 }
 0x3ad   : > { %839 = vrot.lane.b32.xlu1 %v3880_v10, %s4317_s17  ;;  %s4352_s17 = smov 16  }
 0x41f   : > { %v840_v12 = vpop.permute.xlu1 %839 }
 0x420   : > { %v846_v13 = vsel %vm841_vm4, %v840_v12, 0 }
 0x421   : > { %2771 = vmatpush3.bf16.xpose.msra.mxu0 %v846_v13 }
 0x422   : > { %2776 = vmatprep.subr.bf16.mxu0 %v3468_v11 }
 0x428   : > { %2773 = vmatmul.mubr.msk.bf16.vlgmr.msra.gmra.mrb[0].mxu0 %vm841_vm4, %v3880_v10 }
 0x429   : > { %2778 = vmatprep.mubr.msk.bf16.mxu0 %vm3469_vm3, %v3468_v11 }
 0x4fb   : > { %v882_v15 = vpop.f32.mrb[0].mxu0 }
 0x4fc   : > { %v883_v16 = vadd.f32 %v3892_v14, %v882_v15  ;;  %v2774_v17 = vpop.f32.mrb[1].mxu0 }
 0x4fd   : > { %v885_v18 = vpop.f32.mrb[2].mxu0 }
 0x4fe   : > { %v886_v19 = vadd.f32 %v3892_v14, %v885_v18  ;;  %v2775_v20 = vpop.f32.mrb[3].mxu0  ;;  %v889_v21 = vsel %vm841_vm4, %v883_v16, -inf  ;;  %v3095_v18 = vld [vmem:[#allocation10] sm:$0xff]  }
 0x4ff   : > { %890 = vmax.xlane.f32.xlu1 %v889_v21 }
 0x500   : > { %v892_v22 = vsel %vm841_vm4, %v886_v19, -inf }
 0x501   : > { %893 = vmax.xlane.f32.xlu0 %v892_v22 }
 0x510   : > { %961 = vrot.lane.b32.xlu1 %v3880_v10, %s4316_s25  ;;  %s4350_s25 = smov 64  }
 0x58c   : > { %v891_v23 = vpop.xlane.xlu1 %890 }
 0x58d   : > { %v895_v24 = vsub.f32 %v883_v16, %v891_v23 }
 0x58e   : > { %v894_v25 = vpop.xlane.xlu0 %893 }
 0x58f   : > { %v897_v26 = vmul.f32 1.442695, %v895_v24  ;;  %v896_v27 = vsub.f32 %v886_v19, %v894_v25 }
 0x590   : > { %v962_v40 = vpop.permute.xlu1 %961 }
 0x591   : > { %3151 = vpow2.f32 %v897_v26  ;;  %v899_v28 = vmul.f32 1.442695, %v896_v27  ;;  %v967_v42 = vsel %vm841_vm4, %v962_v40, 0 }
 0x593   : > { %3153 = vpow2.f32 %v899_v28 }
 0x59b   : > { %v3152_v29 = vpop.eup %3151 }
 0x59c   : > { %v901_v30 = vsel %vm841_vm4, %v3152_v29, 0.0 }
 0x59d   : > { %v3154_v31 = vpop.eup %3153  ;;  %902 = vadd.xlane.f32.xlu0 %v901_v30  ;;  %v3938_v30 = vld [vmem:[%s4343_s24] sm:$0xff] }
 0x59e   : > { %v904_v32 = vsel %vm841_vm4, %v3154_v31, 0.0 }
 0x5a1   : > { %905 = vadd.xlane.f32.xlu0 %v904_v32 }
 0x5b7   : > { %912 = vrot.lane.b32.xlu0 %v3880_v10, %s4314_s10  ;;  %s4347_s10 = smov 96  }
 0x5bb   : > { %959 = vrot.lane.b32.xlu0 %v3880_v10, %s4315_s18  ;;  %s4348_s18 = smov 80  }
 0x62a   : > { %v903_v33 = vpop.xlane.xlu0 %902 }
 0x62b   : > { %3155 = vrcp.f32 %v903_v33 }
 0x62e   : > { %v906_v34 = vpop.xlane.xlu0 %905 }
 0x62f   : > { %3157 = vrcp.f32 %v906_v34 }
 0x632   : > { %v913_v35 = vpop.permute.xlu0 %912 }
 0x633   : > { %2777 = vmatpush3.bf16.msra.mxu0 %v913_v35 }
 0x634   : > { %2782 = vmatprep.subr.bf16.mxu0 %v3468_v11 }
 0x635   : > { %v3156_v36 = vpop.eup %3155 }
 0x636   : > { %v909_v38 = vmul.f32 %v3156_v36, %v3152_v29  ;;  %v960_v43 = vpop.permute.xlu0 %959 }
 0x639   : > { %v3158_v37 = vpop.eup %3157 }
 0x63a   : > { %v910_v39 = vmul.f32 %v3158_v37, %v3154_v31  ;;  %v1099_v31 = vrot.slane %v3938_v30, %v3861_v51 }
 0x63c   : > { %v911_v41 = vpack.c.bf16 %v910_v39, %v909_v38 }
 0x63e   : > { %2779 = vmatmul.mubr.msk.bf16.vlgmr.msra.gmra.mrb[4].mxu0 %vm841_vm4, %v911_v41 }
 0x63f   : > { %2783 = vmatpush3.bf16.xpose.msra.mxu0 %v967_v42  ;;  %2784 = vmatprep.mubr.msk.bf16.mxu0 %vm3469_vm3, %v3468_v11  ;;  %v3097_v42 = vld [vmem:[%s4344_s20] sm:$0xff]  }
 0x640   : > { %2794 = vmatprep.subr.bf16.mxu0 %v3468_v11 }
 0x646   : > { %2785 = vmatmul.mubr.msk.bf16.vlgmr.msra.gmra.mrb[8].mxu0 %vm841_vm4, %v960_v43  ;;  %v3100_v43 = vld [vmem:[%s4344_s20 + $0x18] sm:$0xff]  }
 0x647   : > { %2798 = vmatprep.mubr.msk.bf16.mxu0 %vm3469_vm3, %v3468_v11  ;;  %2795 = vmatpush3.bf16.msra.mxu0 %v3095_v18 }
 0x648   : > { %2796 = vmatprep.subr.bf16.mxu0 %v3468_v11 }
 0x711   : > { %v952_v44 = vpop.f32.mrb[4].mxu0 }
 0x712   : > { %v2780_v45 = vpop.f32.mrb[5].mxu0 }
 0x713   : > { %v955_v46 = vpop.f32.mrb[6].mxu0  ;;  %v3102_v45 = vld [vmem:[%s4344_s20 + $0x28] sm:$0xff]  }
 0x714   : > { %v2781_v47 = vpop.f32.mrb[7].mxu0 }
 0x715   : > { %v3104_v47 = vld [vmem:[%s4344_s20 + $0x38] sm:$0xff]  }
 0x719   : > { %v1003_v48 = vpop.f32.mrb[8].mxu0 }
 0x71a   : > { %v1004_v49 = vadd.f32 %v3892_v14, %v1003_v48  ;;  %v2786_v52 = vpop.f32.mrb[9].mxu0 }
 0x71b   : > { %v1006_v53 = vpop.f32.mrb[10].mxu0 }
 0x71c   : > { %v1007_v55 = vadd.f32 %v3892_v14, %v1006_v53  ;;  %v2787_v56 = vpop.f32.mrb[11].mxu0  ;;  %v1010_v57 = vsel %vm841_vm4, %v1004_v49, -inf }
 0x71d   : > { %1011 = vmax.xlane.f32.xlu0 %v1010_v57 }
 0x71e   : > { %v1013_v58 = vsel %vm841_vm4, %v1007_v55, -inf }
 0x71f   : > { %1014 = vmax.xlane.f32.xlu1 %v1013_v58 }
 0x7aa   : > { %v1012_v59 = vpop.xlane.xlu0 %1011 }
 0x7ab   : > { %v1016_v60 = vsub.f32 %v1004_v49, %v1012_v59 }
 0x7ac   : > { %v1015_v61 = vpop.xlane.xlu1 %1014 }
 0x7ad   : > { %v1018_v62 = vmul.f32 1.442695, %v1016_v60  ;;  %v1017_v63 = vsub.f32 %v1007_v55, %v1015_v61 }
 0x7af   : > { %3159 = vpow2.f32 %v1018_v62  ;;  %v1020_v2 = vmul.f32 1.442695, %v1017_v63 }
 0x7b1   : > { %3161 = vpow2.f32 %v1020_v2 }
 0x7b9   : > { %v3160_v3 = vpop.eup %3159 }
 0x7ba   : > { %v1022_v4 = vsel %vm841_vm4, %v3160_v3, 0.0 }
 0x7bb   : > { %v3162_v5 = vpop.eup %3161  ;;  %1023 = vadd.xlane.f32.xlu0 %v1022_v4  ;;  %v1188_v4 = vrot.slane %v3938_v30, %v3865_v54 }
 0x7bc   : > { %v1025_v6 = vsel %vm841_vm4, %v3162_v5, 0.0 }
 0x7bf   : > { %1026 = vadd.xlane.f32.xlu0 %v1025_v6 }
 0x7d5   : > { %1033 = vrot.lane.b32.xlu0 %v3880_v10, %s4313_s8  ;;  %v3096_v10 = vld [vmem:[#allocation10 + $0x8] sm:$0xff]   ;;  %s564_s8 = scalar_lea.vmem [#allocation13], %s3786_s9 }
 0x7d6   : > { %2797 = vmatpush3.bf16.msra.mxu0 %v3096_v10 }
 0x7d7   : > { %2822 = vmatprep.subr.bf16.mxu0 %v3468_v11 }
 0x848   : > { %v1024_v7 = vpop.xlane.xlu0 %1023 }
 0x849   : > { %3163 = vrcp.f32 %v1024_v7 }
 0x84c   : > { %v1027_v8 = vpop.xlane.xlu0 %1026 }
 0x84d   : > { %3165 = vrcp.f32 %v1027_v8 }
 0x850   : > { %v1034_v9 = vpop.permute.xlu0 %1033 }
 0x851   : > { %2789 = vmatpush3.bf16.msra.mxu1 %v1034_v9 }
 0x852   : > { %2802 = vmatprep.subr.bf16.mxu1 %v3468_v11 }
 0x853   : > { %v3164_v12 = vpop.eup %3163 }
 0x854   : > { %v1030_v15 = vmul.f32 %v3164_v12, %v3160_v3 }
 0x857   : > { %v3166_v13 = vpop.eup %3165 }
 0x858   : > { %v1031_v16 = vmul.f32 %v3166_v13, %v3162_v5  ;;  %v1193_v5 = vsub.s32 2, %v3858_v50 }
 0x85a   : > { %v1032_v17 = vpack.c.bf16 %v1031_v16, %v1030_v15  ;;  %v1194_v15 = vrot.slane %v3938_v30, %v1193_v5 }
 0x85c   : > { %2791 = vmatmul.mubr.msk.bf16.vlgmr.msra.gmra.mrb[8].mxu1 %vm841_vm4, %v1032_v17 }
 0x85d   : > { %2818 = vmatprep.mubr.msk.bf16.mxu1 %vm3469_vm3, %v3468_v11  ;;  %2803 = vmatpush3.bf16.msra.mxu1 %v3097_v42 }
 0x85e   : > { %2804 = vmatprep.subr.bf16.mxu1 %v3468_v11 }
 0x92f   : > { %v1073_v19 = vpop.f32.mrb[8].mxu1 }
 0x930   : > { %v2792_v20 = vpop.f32.mrb[9].mxu1 }
 0x931   : > { %v1076_v21 = vpop.f32.mrb[10].mxu1  ;;  %v3106_v20 = vld [vmem:[%s4345_s13 + $0x8] sm:$0xff]  }
 0x932   : > { %v3077_v22 = vpack.i.bf16 %v1076_v21, %v1073_v19  ;;  %v2793_v23 = vpop.f32.mrb[11].mxu1  ;;  %v3105_v19 = vld [vmem:[%s4345_s13] sm:$0xff]   ;;  %v3107_v21 = vld [vmem:[%s4345_s13 + $0x10] sm:$0xff]  }
 0x933   : > { %v3109_v23 = vld [vmem:[%s4345_s13 + $0x20] sm:$0xff]  }
 0x934   : > { %3078 = vrot.lane.b32.xlu1 %v3077_v22, %s4312_s21  ;;  %v3108_v22 = vld [vmem:[%s4345_s13 + $0x18] sm:$0xff]   ;;  %s2365_s21 = sshll.u32 %s564_s8, 4  ;;  %s4247_s21 = int_to_ptr.vmem [resolvable:$true] %s2365_s21 }
 0x9a6   : > { %v3079_v24 = vpop.permute.xlu1 %3078 }
 0x9a7   : > { %v3081_v25 = vunpack.i.h.bf16 %v3079_v24  ;;  %v3080_v26 = vunpack.i.l.bf16 %v3079_v24  ;;  %v3110_v24 = vld [vmem:[%s4345_s13 + $0x28] sm:$0xff]  }
 0x9a9   : > { %v1089_v27 = vsel %vm841_vm4, %v955_v46, %v3081_v25  ;;  %v1088_v28 = vsel %vm841_vm4, %v952_v44, %v3080_v26  ;;  %v3101_v44 = vld [vmem:[%s4344_s20 + $0x20] sm:$0xff]   ;;  %v3103_v46 = vld [vmem:[%s4344_s20 + $0x30] sm:$0xff]   ;;  %v3112_v26 = vld [vmem:[%s4345_s13 + $0x38] sm:$0xff]  }
 0x9aa   : > { %v1091_v29 = vpack.c.bf16 %v1089_v27, %v1088_v28  ;;  %v3111_v25 = vld [vmem:[%s4345_s13 + $0x30] sm:$0xff]   ;;  %v2526_v27 = vld [vmem:[%s4346_s27] ss:$0 sm:$0xff] }
 0x9ac   : > { %2799 = vmatmul.mubr.msk.bf16.vlgmr.msra.gmra.mrb[12].mxu0 %vm1112_vm5, %v1091_v29 }
 0x9ad   : > { %2838 = vmatprep.mubr.msk.bf16.mxu0 %vm3469_vm3, %v3468_v11  ;;  %2823 = vmatpush3.bf16.msra.mxu0 %v3105_v19 }
 0x9ae   : > { %2824 = vmatprep.subr.bf16.mxu0 %v3468_v11 }
 0x9b1   : > { %2825 = vmatpush3.bf16.msra.mxu0 %v3106_v20 }
 0x9b2   : > { %2826 = vmatprep.subr.bf16.mxu0 %v3468_v11 }
 0x9b5   : > { %2827 = vmatpush3.bf16.msra.mxu0 %v3107_v21 }
 0x9b6   : > { %2828 = vmatprep.subr.bf16.mxu0 %v3468_v11 }
 0x9b9   : > { %2829 = vmatpush3.bf16.msra.mxu0 %v3108_v22 }
 0x9ba   : > { %2830 = vmatprep.subr.bf16.mxu0 %v3468_v11 }
 0x9bd   : > { %2831 = vmatpush3.bf16.msra.mxu0 %v3109_v23 }
 0x9be   : > { %2832 = vmatprep.subr.bf16.mxu0 %v3468_v11 }
 0x9c1   : > { %2833 = vmatpush3.bf16.msra.mxu0 %v3110_v24 }
 0x9c2   : > { %2834 = vmatprep.subr.bf16.mxu0 %v3468_v11 }
 0x9c5   : > { %2835 = vmatpush3.bf16.msra.mxu0 %v3111_v25 }
 0x9c6   : > { %2836 = vmatprep.subr.bf16.mxu0 %v3468_v11 }
 0x9c9   : > { %2837 = vmatpush3.bf16.msra.mxu0 %v3112_v26 }
 0x9ca   : > { %2862 = vmatprep.subr.bf16.mxu0 %v3468_v11 }
 0xa7f   : > { %v1150_v32 = vpop.f32.mrb[12].mxu0 }
 0xa80   : > { %v1151_v33 = vadd.f32 %v1150_v32, %v1099_v31  ;;  %v2800_v34 = vpop.f32.mrb[13].mxu0 }
 0xa81   : > { %v1153_v35 = vpop.f32.mrb[14].mxu0 }
 0xa82   : > { %v1157_v36 = vadd.f32 %v1151_v33, %v3869_v0  ;;  %v1154_v37 = vadd.f32 %v1153_v35, %v1099_v31  ;;  %v2801_v38 = vpop.f32.mrb[15].mxu0  ;;  %v3098_v0 = vld [vmem:[%s4344_s20 + $0x8] sm:$0xff]  }
 0xa83   : > { %2805 = vmatpush3.bf16.msra.mxu1 %v3098_v0 }
 0xa84   : > { %v1158_v39 = vadd.f32 %v1154_v37, %v3871_v1  ;;  %1159 = vadd.xlane.f32.xlu1 %v1157_v36  ;;  %v1165_v41 = vmul.f32 %v1157_v36, %v1157_v36  ;;  %2806 = vmatprep.subr.bf16.mxu1 %v3468_v11  ;;  %v3099_v1 = vld [vmem:[%s4344_s20 + $0x10] sm:$0xff]  }
 0xa86   : > { %1161 = vadd.xlane.f32.xlu0 %v1158_v39  ;;  %v1166_v40 = vmul.f32 %v1158_v39, %v1158_v39 }
 0xa87   : > { %2807 = vmatpush3.bf16.msra.mxu1 %v3099_v1 }
 0xa88   : > { %1169 = vadd.xlane.f32.xlu1 %v1166_v40  ;;  %2808 = vmatprep.subr.bf16.mxu1 %v3468_v11 }
 0xa8a   : > { %1167 = vadd.xlane.f32.xlu0 %v1165_v41 }
 0xa8b   : > { %2809 = vmatpush3.bf16.msra.mxu1 %v3100_v43 }
 0xa8c   : > { %2810 = vmatprep.subr.bf16.mxu1 %v3468_v11 }
 0xa8f   : > { %2811 = vmatpush3.bf16.msra.mxu1 %v3101_v44 }
 0xa90   : > { %2812 = vmatprep.subr.bf16.mxu1 %v3468_v11 }
 0xa93   : > { %2813 = vmatpush3.bf16.msra.mxu1 %v3102_v45 }
 0xa94   : > { %2814 = vmatprep.subr.bf16.mxu1 %v3468_v11 }
 0xa97   : > { %2815 = vmatpush3.bf16.msra.mxu1 %v3103_v46 }
 0xa98   : > { %2816 = vmatprep.subr.bf16.mxu1 %v3468_v11 }
 0xa9b   : > { %2817 = vmatpush3.bf16.msra.mxu1 %v3104_v47 }
 0xa9c   : > { %2842 = vmatprep.subr.bf16.mxu1 %v3468_v11 }
 0xb11   : > { %v1160_v48 = vpop.xlane.xlu1 %1159 }
 0xb12   : > { %v1163_v52 = vmul.f32 0.03125, %v1160_v48 }
 0xb13   : > { %v1162_v49 = vpop.xlane.xlu0 %1161 }
 0xb14   : > { %v1164_v53 = vmul.f32 0.03125, %v1162_v49  ;;  %v1173_v59 = vmul.f32 %v1163_v52, %v1163_v52  ;;  %v1177_v7 = vsub.f32 %v1157_v36, %v1163_v52 }
 0xb15   : > { %v1170_v55 = vpop.xlane.xlu1 %1169 }
 0xb16   : > { %v1174_v56 = vmul.f32 %v1164_v53, %v1164_v53  ;;  %v1172_v57 = vmul.f32 0.03125, %v1170_v55  ;;  %v1178_v3 = vsub.f32 %v1158_v39, %v1164_v53  ;;  %v1347_v55 = vsub.s32 3, %v3858_v50 }
 0xb17   : > { %v1168_v58 = vpop.xlane.xlu0 %1167 }
 0xb18   : > { %v1176_v60 = vsub.f32 %v1172_v57, %v1174_v56  ;;  %v1171_v61 = vmul.f32 0.03125, %v1168_v58  ;;  %v1348_v56 = vrot.slane %v3938_v30, %v1347_v55 }
 0xb1a   : > { %v1180_v62 = vadd.f32 1e-12, %v1176_v60  ;;  %v1175_v63 = vsub.f32 %v1171_v61, %v1173_v59 }
 0xb1c   : > { %3167 = vrsqrt.f32 %v1180_v62  ;;  %v1179_v2 = vadd.f32 1e-12, %v1175_v63 }
 0xb1e   : > { %3169 = vrsqrt.f32 %v1179_v2 }
 0xb26   : > { %v3168_v6 = vpop.eup %3167 }
 0xb27   : > { %v1184_v8 = vmul.f32 %v3168_v6, %v1178_v3  ;;  %v3113_v6 = vld [vmem:[%s4294_s5 + $0x40] sm:$0xff]  }
 0xb28   : > { %v3170_v9 = vpop.eup %3169 }
 0xb29   : > { %v1183_v12 = vmul.f32 %v3170_v9, %v1177_v7  ;;  %v1190_v13 = vmul.f32 %v1188_v4, %v1184_v8  ;;  %v3114_v7 = vld [vmem:[%s4294_s5 + $0x48] sm:$0xff]   ;;  %v3115_v8 = vld [vmem:[%s4294_s5 + $0x50] sm:$0xff]   ;;  %v3116_v9 = vld [vmem:[%s4294_s5 + $0x58] sm:$0xff]  }
 0xb2b   : > { %v1189_v16 = vmul.f32 %v1188_v4, %v1183_v12  ;;  %v3984_v18 = vadd.f32 %v1194_v15, %v1190_v13  ;;  %v3117_v12 = vld [vmem:[%s4294_s5 + $0x60] sm:$0xff]   ;;  %v3118_v13 = vld [vmem:[%s4294_s5 + $0x68] sm:$0xff]  }
 0xb2d   : > { %v3982_v17 = vadd.f32 %v1194_v15, %v1189_v16  ;;  %v3119_v15 = vld [vmem:[%s4294_s5 + $0x70] sm:$0xff]   ;;  %v3120_v16 = vld [vmem:[%s4294_s5 + $0x78] sm:$0xff]  }
 0xb2f   : > { %v1197_v10 = vpack.c.bf16 %v3984_v18, %v3982_v17 }
 0xb31   : > { %2819 = vmatmul.mubr.bf16.vlgmr.msra.gmra.mrb[12].mxu1 %v1197_v10 }
 0xb32   : > { %2858 = vmatprep.mubr.msk.bf16.mxu1 %vm3469_vm3, %v3468_v11  ;;  %2843 = vmatpush3.bf16.msra.mxu1 %v3113_v6 }
 0xb33   : > { %2844 = vmatprep.subr.bf16.mxu1 %v3468_v11 }
 0xb36   : > { %2845 = vmatpush3.bf16.msra.mxu1 %v3114_v7 }
 0xb37   : > { %2846 = vmatprep.subr.bf16.mxu1 %v3468_v11 }
 0xb3a   : > { %2847 = vmatpush3.bf16.msra.mxu1 %v3115_v8 }
 0xb3b   : > { %2848 = vmatprep.subr.bf16.mxu1 %v3468_v11 }
 0xb3e   : > { %2849 = vmatpush3.bf16.msra.mxu1 %v3116_v9 }
 0xb3f   : > { %2850 = vmatprep.subr.bf16.mxu1 %v3468_v11 }
 0xb42   : > { %2851 = vmatpush3.bf16.msra.mxu1 %v3117_v12 }
 0xb43   : > { %2852 = vmatprep.subr.bf16.mxu1 %v3468_v11 }
 0xb46   : > { %2853 = vmatpush3.bf16.msra.mxu1 %v3118_v13 }
 0xb47   : > { %2854 = vmatprep.subr.bf16.mxu1 %v3468_v11 }
 0xb4a   : > { %2855 = vmatpush3.bf16.msra.mxu1 %v3119_v15 }
 0xb4b   : > { %2856 = vmatprep.subr.bf16.mxu1 %v3468_v11 }
 0xb4e   : > { %2857 = vmatpush3.bf16.msra.mxu1 %v3120_v16 }
 0xb4f   : > { %2886 = vmatprep.subr.bf16.mxu1 %v3468_v11 }
 0xc04   : > { %v1303_v28 = vpop.f32.mrb[12].mxu1 }
 0xc05   : > { %v1304_v29 = vadd.f32 %v2526_v27, %v1303_v28  ;;  %v2820_v31 = vpop.f32.mrb[13].mxu1 }
 0xc06   : > { %v1306_v32 = vpop.f32.mrb[14].mxu1  ;;  %v1468_v31 = vsub.s32 4, %v3858_v50 }
 0xc07   : > { %v1312_v33 = vmul.f32 0.044715, %v1304_v29  ;;  %v1307_v34 = vadd.f32 %v2526_v27, %v1306_v32  ;;  %v2821_v35 = vpop.f32.mrb[15].mxu1  ;;  %v1310_v46 = vmul.f32 0.5, %v1304_v29 }
 0xc09   : > { %v1314_v36 = vmul.f32 %v1312_v33, %v1304_v29  ;;  %v1313_v37 = vmul.f32 0.044715, %v1307_v34  ;;  %v1311_v47 = vmul.f32 0.5, %v1307_v34  ;;  %v1469_v33 = vrot.slane %v3938_v30, %v1468_v31 }
 0xc0b   : > { %v1316_v38 = vmul.f32 %v1314_v36, %v1304_v29  ;;  %v1315_v39 = vmul.f32 %v1313_v37, %v1307_v34 }
 0xc0d   : > { %v1318_v40 = vadd.f32 %v1316_v38, %v1304_v29  ;;  %v1317_v41 = vmul.f32 %v1315_v39, %v1307_v34 }
 0xc0f   : > { %v1320_v42 = vmul.f32 0.7978845, %v1318_v40  ;;  %v1319_v0 = vadd.f32 %v1317_v41, %v1307_v34  ;;  %v1474_v34 = vsub.s32 5, %v3858_v50 }
 0xc11   : > { %3171 = vtanh.f32 %v1320_v42  ;;  %v1321_v1 = vmul.f32 0.7978845, %v1319_v0  ;;  %v1475_v41 = vrot.slane %v3938_v30, %v1474_v34 }
 0xc13   : > { %3173 = vtanh.f32 %v1321_v1 }
 0xc1b   : > { %v3172_v43 = vpop.eup %3171 }
 0xc1c   : > { %v1324_v44 = vadd.f32 1.0, %v3172_v43 }
 0xc1d   : > { %v3174_v45 = vpop.eup %3173 }
 0xc1e   : > { %v1325_v48 = vadd.f32 1.0, %v3174_v45  ;;  %v1326_v49 = vmul.f32 %v1324_v44, %v1310_v46  ;;  %v2560_v44 = vld [vmem:[%s4295_s6 + $0x1] ss:$0 sm:$0xff] }
 0xc20   : > { %v1327_v52 = vmul.f32 %v1325_v48, %v1311_v47 }
 0xc22   : > { %v1328_v53 = vpack.c.bf16 %v1327_v52, %v1326_v49 }
 0xc24   : > { %2839 = vmatmul.mubr.bf16.vlgmr.msra.gmra.mrb[16].mxu0 %v1328_v53 }
 0xc25   : > { %2864 = vmatprep.mubr.msk.bf16.mxu0 %vm3469_vm3, %v3468_v11 }
 0xcf7   : > { %v1431_v57 = vpop.f32.mrb[16].mxu0 }
 0xcf8   : > { %v1432_v58 = vadd.f32 %v1431_v57, %v1348_v56  ;;  %v2840_v59 = vpop.f32.mrb[17].mxu0 }
 0xcf9   : > { %v1434_v60 = vpop.f32.mrb[18].mxu0 }
 0xcfa   : > { %v1438_v61 = vadd.f32 %v1432_v58, %v3982_v17  ;;  %v1435_v62 = vadd.f32 %v1434_v60, %v1348_v56  ;;  %v2841_v63 = vpop.f32.mrb[19].mxu0 }
 0xcfc   : > { %v1439_v2 = vadd.f32 %v1435_v62, %v3984_v18  ;;  %1440 = vadd.xlane.f32.xlu0 %v1438_v61  ;;  %v1446_v3 = vmul.f32 %v1438_v61, %v1438_v61 }
 0xcfe   : > { %1442 = vadd.xlane.f32.xlu1 %v1439_v2  ;;  %v1447_v4 = vmul.f32 %v1439_v2, %v1439_v2 }
 0xd00   : > { %1448 = vadd.xlane.f32.xlu0 %v1446_v3 }
 0xd02   : > { %1450 = vadd.xlane.f32.xlu1 %v1447_v4 }
 0xd89   : > { %v1441_v17 = vpop.xlane.xlu0 %1440 }
 0xd8a   : > { %v1444_v18 = vmul.f32 0.03125, %v1441_v17 }
 0xd8b   : > { %v1443_v10 = vpop.xlane.xlu1 %1442 }
 0xd8c   : > { %v1445_v19 = vmul.f32 0.03125, %v1443_v10  ;;  %v1454_v21 = vmul.f32 %v1444_v18, %v1444_v18  ;;  %v1458_v32 = vsub.f32 %v1438_v61, %v1444_v18 }
 0xd8d   : > { %v1449_v20 = vpop.xlane.xlu0 %1448 }
 0xd8e   : > { %v1452_v22 = vmul.f32 0.03125, %v1449_v20  ;;  %v1455_v24 = vmul.f32 %v1445_v19, %v1445_v19  ;;  %v1459_v36 = vsub.f32 %v1439_v2, %v1445_v19 }
 0xd8f   : > { %v1451_v23 = vpop.xlane.xlu1 %1450 }
 0xd90   : > { %v1456_v25 = vsub.f32 %v1452_v22, %v1454_v21  ;;  %v1453_v26 = vmul.f32 0.03125, %v1451_v23 }
 0xd92   : > { %v1460_v27 = vadd.f32 1e-12, %v1456_v25  ;;  %v1457_v28 = vsub.f32 %v1453_v26, %v1455_v24 }
 0xd94   : > { %3175 = vrsqrt.f32 %v1460_v27  ;;  %v1461_v29 = vadd.f32 1e-12, %v1457_v28 }
 0xd96   : > { %3177 = vrsqrt.f32 %v1461_v29 }
 0xd9e   : > { %v3176_v35 = vpop.eup %3175 }
 0xd9f   : > { %v1464_v37 = vmul.f32 %v3176_v35, %v1458_v32 }
 0xda0   : > { %v3178_v38 = vpop.eup %3177 }
 0xda1   : > { %v1465_v39 = vmul.f32 %v3178_v38, %v1459_v36  ;;  %v1470_v40 = vmul.f32 %v1469_v33, %v1464_v37 }
 0xda3   : > { %v1471_v42 = vmul.f32 %v1469_v33, %v1465_v39  ;;  %v4073_v0 = vadd.f32 %v1475_v41, %v1470_v40 }
 0xda5   : > { %v4075_v1 = vadd.f32 %v1475_v41, %v1471_v42 }
 0xda7   : > { %v1478_v43 = vpack.c.bf16 %v4075_v1, %v4073_v0 }
 0xda9   : > { %2859 = vmatmul.mubr.bf16.vlgmr.msra.gmra.mrb[16].mxu1 %v1478_v43 }
 0xdaa   : > { %2890 = vmatprep.mubr.msk.bf16.mxu1 %vm3469_vm3, %v3468_v11 }
 0xe7c   : > { %v1586_v45 = vpop.f32.mrb[16].mxu1 }
 0xe7d   : > { %v2860_v46 = vpop.f32.mrb[17].mxu1  ;;  %v1587_v30 = vadd.f32 %v2560_v44, %v1586_v45 }
 0xe7e   : > { %v1589_v47 = vpop.f32.mrb[18].mxu1 }
 0xe7f   : > { %v1590_v48 = vadd.f32 %v2560_v44, %v1589_v47  ;;  %v2861_v49 = vpop.f32.mrb[19].mxu1 }
 0xe81   : > { %v4084_v52 = vpack.c.bf16 %v1590_v48, %v1587_v30 }
 0xe83   : > { %1595 = vrot.lane.b32.xlu0 %v4084_v52, %s4347_s10 }
 0xe87   : > { %1716 = vrot.lane.b32.xlu0 %v4084_v52, %s4348_s18 }
 0xe8b   : > { %1714 = vrot.lane.b32.xlu0 %v4084_v52, %s4349_s22  ;;  %s2353_s22 = scalar_lea.sflag [#allocation4], %s3786_s9 }
 0xef5   : > { %v1596_v53 = vpop.permute.xlu0 %1595 }
 0xef6   : > { %v1601_v56 = vsel %vm841_vm4, %v1596_v53, 0 }
 0xef7   : > { %2863 = vmatpush3.bf16.xpose.msra.mxu0 %v1601_v56 }
 0xef8   : > { %2868 = vmatprep.subr.bf16.mxu0 %v3468_v11 }
 0xef9   : > { %v1717_v23 = vpop.permute.xlu0 %1716 }
 0xefa   : > { %v1722_v25 = vsel %vm841_vm4, %v1717_v23, 0 }
 0xefd   : > { %v1715_v26 = vpop.permute.xlu0 %1714 }
 0xefe   : > { %2865 = vmatmul.mubr.msk.bf16.vlgmr.msra.gmra.mrb[20].mxu0 %vm841_vm4, %v4084_v52 }
 0xeff   : > { %2870 = vmatprep.mubr.msk.bf16.mxu0 %vm3469_vm3, %v3468_v11 }
 0xfd1   : > { %v1637_v57 = vpop.f32.mrb[20].mxu0 }
 0xfd2   : > { %v1638_v58 = vadd.f32 %v3892_v14, %v1637_v57  ;;  %v2866_v59 = vpop.f32.mrb[21].mxu0 }
 0xfd3   : > { %v1640_v60 = vpop.f32.mrb[22].mxu0 }
 0xfd4   : > { %v1641_v61 = vadd.f32 %v3892_v14, %v1640_v60  ;;  %v2867_v62 = vpop.f32.mrb[23].mxu0  ;;  %v1644_v63 = vsel %vm841_vm4, %v1638_v58, -inf }
 0xfd5   : > { %1645 = vmax.xlane.f32.xlu1 %v1644_v63  ;;  %v3121_v63 = vld [vmem:[#allocation10 + $0x10] sm:$0xff]  }
 0xfd6   : > { %v1647_v2 = vsel %vm841_vm4, %v1641_v61, -inf  ;;  %2887 = vmatpush3.bf16.msra.mxu1 %v3121_v63 }
 0xfd7   : > { %2888 = vmatprep.subr.bf16.mxu1 %v3468_v11 }
 0xfd9   : > { %1648 = vmax.xlane.f32.xlu1 %v1647_v2 }
0x1062   : > { %v1646_v3 = vpop.xlane.xlu1 %1645 }
0x1063   : > { %v1650_v4 = vsub.f32 %v1638_v58, %v1646_v3 }
0x1065   : > { %v1652_v6 = vmul.f32 1.442695, %v1650_v4 }
0x1066   : > { %v1649_v7 = vpop.xlane.xlu1 %1648 }
0x1067   : > { %3179 = vpow2.f32 %v1652_v6  ;;  %v1651_v8 = vsub.f32 %v1641_v61, %v1649_v7 }
0x1069   : > { %v1654_v9 = vmul.f32 1.442695, %v1651_v8 }
0x106b   : > { %3181 = vpow2.f32 %v1654_v9 }
0x1071   : > { %v3180_v12 = vpop.eup %3179 }
0x1072   : > { %v1656_v13 = vsel %vm841_vm4, %v3180_v12, 0.0 }
0x1073   : > { %1657 = vadd.xlane.f32.xlu1 %v1656_v13 }
0x1075   : > { %v3182_v15 = vpop.eup %3181 }
0x1076   : > { %v1659_v16 = vsel %vm841_vm4, %v3182_v15, 0.0 }
0x1077   : > { %1660 = vadd.xlane.f32.xlu1 %v1659_v16 }
0x1088   : > { %1667 = vrot.lane.b32.xlu1 %v4084_v52, %s4350_s25  ;;  %s3476_s25 = smov [#allocation13]  }
0x1100   : > { %v1658_v17 = vpop.xlane.xlu1 %1657 }
0x1101   : > { %3183 = vrcp.f32 %v1658_v17  ;;  %v4138_v17 = vld [vmem:[%s4343_s24 + $0x8] sm:$0xff] }
0x1104   : > { %v1661_v18 = vpop.xlane.xlu1 %1660 }
0x1105   : > { %3185 = vrcp.f32 %v1661_v18  ;;  %v1856_v18 = vrot.slane %v4138_v17, %v3861_v51  ;;  %v3123_v51 = vld [vmem:[%s4344_s20 + $0x40] sm:$0xff]  }
0x1108   : > { %v1668_v10 = vpop.permute.xlu1 %1667 }
0x1109   : > { %2869 = vmatpush3.bf16.msra.mxu0 %v1668_v10 }
0x110a   : > { %2874 = vmatprep.subr.bf16.mxu0 %v3468_v11 }
0x110b   : > { %v3184_v19 = vpop.eup %3183 }
0x110c   : > { %v1664_v21 = vmul.f32 %v3184_v19, %v3180_v12 }
0x110f   : > { %v3186_v20 = vpop.eup %3185 }
0x1110   : > { %v1665_v22 = vmul.f32 %v3186_v20, %v3182_v15 }
0x1112   : > { %v1666_v24 = vpack.c.bf16 %v1665_v22, %v1664_v21 }
0x1114   : > { %2871 = vmatmul.mubr.msk.bf16.vlgmr.msra.gmra.mrb[24].mxu0 %vm841_vm4, %v1666_v24 }
0x1115   : > { %2875 = vmatpush3.bf16.xpose.msra.mxu0 %v1722_v25  ;;  %2876 = vmatprep.mubr.msk.bf16.mxu0 %vm3469_vm3, %v3468_v11 }
0x1116   : > { %2880 = vmatprep.subr.bf16.mxu0 %v3468_v11 }
0x111c   : > { %2877 = vmatmul.mubr.msk.bf16.vlgmr.msra.gmra.mrb[28].mxu0 %vm841_vm4, %v1715_v26 }
0x111d   : > { %2882 = vmatprep.mubr.msk.bf16.mxu0 %vm3469_vm3, %v3468_v11 }
0x11e7   : > { %v1707_v27 = vpop.f32.mrb[24].mxu0 }
0x11e8   : > { %v2872_v28 = vpop.f32.mrb[25].mxu0 }
0x11e9   : > { %v1710_v29 = vpop.f32.mrb[26].mxu0  ;;  %v3126_v28 = vld [vmem:[%s4344_s20 + $0x58] sm:$0xff]  }
0x11ea   : > { %v2873_v32 = vpop.f32.mrb[27].mxu0 }
0x11eb   : > { %v3128_v32 = vld [vmem:[%s4344_s20 + $0x68] sm:$0xff]  }
0x11ef   : > { %v1758_v33 = vpop.f32.mrb[28].mxu0 }
0x11f0   : > { %v1759_v35 = vadd.f32 %v3892_v14, %v1758_v33  ;;  %v2878_v36 = vpop.f32.mrb[29].mxu0  ;;  %v3129_v33 = vld [vmem:[%s4344_s20 + $0x70] sm:$0xff]  }
0x11f1   : > { %v1761_v37 = vpop.f32.mrb[30].mxu0 }
0x11f2   : > { %v1762_v38 = vadd.f32 %v3892_v14, %v1761_v37  ;;  %v2879_v39 = vpop.f32.mrb[31].mxu0  ;;  %v1765_v40 = vsel %vm841_vm4, %v1759_v35, -inf }
0x11f3   : > { %1766 = vmax.xlane.f32.xlu0 %v1765_v40 }
0x11f4   : > { %v1768_v41 = vsel %vm841_vm4, %v1762_v38, -inf }
0x11f5   : > { %1769 = vmax.xlane.f32.xlu1 %v1768_v41 }
0x1280   : > { %v1767_v42 = vpop.xlane.xlu0 %1766 }
0x1281   : > { %v1771_v43 = vsub.f32 %v1759_v35, %v1767_v42  ;;  %v3130_v35 = vld [vmem:[%s4344_s20 + $0x78] sm:$0xff]  }
0x1282   : > { %v1770_v44 = vpop.xlane.xlu1 %1769 }
0x1283   : > { %v1773_v45 = vmul.f32 1.442695, %v1771_v43  ;;  %v1772_v46 = vsub.f32 %v1762_v38, %v1770_v44 }
0x1285   : > { %3187 = vpow2.f32 %v1773_v45  ;;  %v1775_v47 = vmul.f32 1.442695, %v1772_v46 }
0x1287   : > { %3189 = vpow2.f32 %v1775_v47 }
0x128f   : > { %v3188_v30 = vpop.eup %3187 }
0x1290   : > { %v1777_v48 = vsel %vm841_vm4, %v3188_v30, 0.0 }
0x1291   : > { %v3190_v49 = vpop.eup %3189  ;;  %1778 = vadd.xlane.f32.xlu0 %v1777_v48 }
0x1292   : > { %v1780_v14 = vsel %vm841_vm4, %v3190_v49, 0.0 }
0x1295   : > { %1781 = vadd.xlane.f32.xlu0 %v1780_v14  ;;  %v1944_v14 = vrot.slane %v4138_v17, %v3865_v54  ;;  %v3131_v54 = vld [vmem:[%s4345_s13 + $0x40] sm:$0xff]  }
0x12ab   : > { %1788 = vrot.lane.b32.xlu0 %v4084_v52, %s4351_s14  ;;  %v3122_v52 = vld [vmem:[#allocation10 + $0x18] sm:$0xff]   ;;  %s4353_s14 = sld [smem:[#allocation25_spill]] }
0x12ac   : > { %2889 = vmatpush3.bf16.msra.mxu1 %v3122_v52 }
0x12ad   : > { %2914 = vmatprep.subr.bf16.mxu1 %v3468_v11 }
0x12b1   : > { %v2262_v50 = vld [vmem:[%s4353_s14] sm:$0x1]  ;;  %s3381_s14 = sshll.u32 %s3476_s25, 4  ;;  %s3382_s14 = int_to_ptr.vmem [resolvable:$false] %s3381_s14 }
0x12b2   : > { %s3383_s10 = scalar_lea.vmem %s3382_s14, 32  ;;  %p3384_p0 = scmp.lt.s32.totalorder %s4247_s21, %s3382_s14 }
0x131e   : > { %v1779_v53 = vpop.xlane.xlu0 %1778 }
0x131f   : > { %3191 = vrcp.f32 %v1779_v53 }
0x1322   : > { %v1782_v56 = vpop.xlane.xlu0 %1781 }
0x1323   : > { %3193 = vrcp.f32 %v1782_v56 }
0x1326   : > { %v1789_v57 = vpop.permute.xlu0 %1788 }
0x1327   : > { %2881 = vmatpush3.bf16.msra.mxu0 %v1789_v57 }
0x1328   : > { %2894 = vmatprep.subr.bf16.mxu0 %v3468_v11 }
0x1329   : > { %v3192_v58 = vpop.eup %3191 }
0x132a   : > { %v1785_v60 = vmul.f32 %v3192_v58, %v3188_v30 }
0x132d   : > { %v3194_v59 = vpop.eup %3193 }
0x132e   : > { %v1786_v61 = vmul.f32 %v3194_v59, %v3190_v49 }
0x1330   : > { %v1787_v62 = vpack.c.bf16 %v1786_v61, %v1785_v60  ;;  %v1950_v61 = vrot.slane %v4138_v17, %v1193_v5  ;;  %v3132_v5 = vld [vmem:[%s4345_s13 + $0x48] sm:$0xff]  }
0x1332   : > { %2883 = vmatmul.mubr.msk.bf16.vlgmr.msra.gmra.mrb[32].mxu0 %vm841_vm4, %v1787_v62 }
0x1333   : > { %2910 = vmatprep.mubr.msk.bf16.mxu0 %vm3469_vm3, %v3468_v11  ;;  %2895 = vmatpush3.bf16.msra.mxu0 %v3123_v51 }
0x1334   : > { %2896 = vmatprep.subr.bf16.mxu0 %v3468_v11 }
0x1405   : > { %v1828_v2 = vpop.f32.mrb[32].mxu0 }
0x1406   : > { %v2884_v3 = vpop.f32.mrb[33].mxu0 }
0x1407   : > { %v1831_v4 = vpop.f32.mrb[34].mxu0  ;;  %v3133_v3 = vld [vmem:[%s4345_s13 + $0x50] sm:$0xff]  }
0x1408   : > { %v3082_v6 = vpack.i.bf16 %v1831_v4, %v1828_v2  ;;  %v2885_v7 = vpop.f32.mrb[35].mxu0  ;;  %v3134_v4 = vld [vmem:[%s4345_s13 + $0x58] sm:$0xff]  }
0x1409   : > { %v3136_v7 = vld [vmem:[%s4345_s13 + $0x68] sm:$0xff]  }
0x140a   : > { %3083 = vrot.lane.b32.xlu1 %v3082_v6, %s4352_s17  ;;  %v3135_v6 = vld [vmem:[%s4345_s13 + $0x60] sm:$0xff]   ;;  %s2635_s17 = sshll.u32 %s3573_s19, 4  ;;  %s3377_s19 = scalar_lea.vmem %s4247_s21, 16 }
0x140b   : > { %s4245_s1 = scalar_lea.hbm %s4354_s0, %s2635_s17  ;;  %p3378_p4 = scmp.ne.s32.totalorder %s4247_s21, %s3377_s19 }
0x140c   : > { %p3385_p2 = scmp.lt.s32.totalorder %s3383_s10, %s3377_s19 }
0x140d   : > { %p3379_p1 = pnand %p3378_p4, %p4355_p12 }
0x140e   : > { %p3386_p3 = por %p3385_p2, %p3384_p0 }
0x140f   : > { %p3380_p13 = pneg %p3379_p1 }
0x1411   : > { %p3387_p6 = pnand %p3386_p3, %p3380_p13 }
0x147c   : > { %v3084_v8 = vpop.permute.xlu1 %3083 }
0x147d   : > { %v3086_v9 = vunpack.i.h.bf16 %v3084_v8  ;;  %v3085_v12 = vunpack.i.l.bf16 %v3084_v8  ;;  %v3137_v8 = vld [vmem:[%s4345_s13 + $0x70] sm:$0xff]  }
0x147f   : > { %v1844_v13 = vsel %vm841_vm4, %v1710_v29, %v3086_v9  ;;  %v1843_v15 = vsel %vm841_vm4, %v1707_v27, %v3085_v12  ;;  %v3127_v29 = vld [vmem:[%s4344_s20 + $0x60] sm:$0xff]   ;;  %v3138_v9 = vld [vmem:[%s4345_s13 + $0x78] sm:$0xff]  }
0x1480   : > { %v1847_v16 = vpack.c.bf16 %v1844_v13, %v1843_v15  ;;  %v2594_v12 = vld [vmem:[%s4346_s27 + $0x1] ss:$0 sm:$0xff] }
0x1482   : > { %2891 = vmatmul.mubr.msk.bf16.vlgmr.msra.gmra.mrb[20].mxu1 %vm1112_vm5, %v1847_v16 }
0x1483   : > { %2930 = vmatprep.mubr.msk.bf16.mxu1 %vm3469_vm3, %v3468_v11  ;;  %2915 = vmatpush3.bf16.msra.mxu1 %v3131_v54 }
0x1484   : > { %2916 = vmatprep.subr.bf16.mxu1 %v3468_v11 }
0x1487   : > { %2917 = vmatpush3.bf16.msra.mxu1 %v3132_v5 }
0x1488   : > { %2918 = vmatprep.subr.bf16.mxu1 %v3468_v11 }
0x148b   : > { %2919 = vmatpush3.bf16.msra.mxu1 %v3133_v3 }
0x148c   : > { %2920 = vmatprep.subr.bf16.mxu1 %v3468_v11 }
0x148f   : > { %2921 = vmatpush3.bf16.msra.mxu1 %v3134_v4 }
0x1490   : > { %2922 = vmatprep.subr.bf16.mxu1 %v3468_v11 }
0x1493   : > { %2923 = vmatpush3.bf16.msra.mxu1 %v3135_v6 }
0x1494   : > { %2924 = vmatprep.subr.bf16.mxu1 %v3468_v11 }
0x1497   : > { %2925 = vmatpush3.bf16.msra.mxu1 %v3136_v7 }
0x1498   : > { %2926 = vmatprep.subr.bf16.mxu1 %v3468_v11 }
0x149b   : > { %2927 = vmatpush3.bf16.msra.mxu1 %v3137_v8 }
0x149c   : > { %2928 = vmatprep.subr.bf16.mxu1 %v3468_v11 }
0x149f   : > { %2929 = vmatpush3.bf16.msra.mxu1 %v3138_v9 }
0x1555   : > { %v1906_v10 = vpop.f32.mrb[20].mxu1 }
0x1556   : > { %v1907_v19 = vadd.f32 %v1906_v10, %v1856_v18  ;;  %v2892_v20 = vpop.f32.mrb[21].mxu1 }
0x1557   : > { %v1909_v21 = vpop.f32.mrb[22].mxu1 }
0x1558   : > { %v1913_v22 = vadd.f32 %v1907_v19, %v4073_v0  ;;  %v1910_v23 = vadd.f32 %v1909_v21, %v1856_v18  ;;  %v2893_v24 = vpop.f32.mrb[23].mxu1  ;;  %v3124_v0 = vld [vmem:[%s4344_s20 + $0x48] sm:$0xff]  }
0x1559   : > { %2897 = vmatpush3.bf16.msra.mxu0 %v3124_v0 }
0x155a   : > { %v1914_v25 = vadd.f32 %v1910_v23, %v4075_v1  ;;  %1915 = vadd.xlane.f32.xlu1 %v1913_v22  ;;  %v1921_v27 = vmul.f32 %v1913_v22, %v1913_v22  ;;  %2898 = vmatprep.subr.bf16.mxu0 %v3468_v11  ;;  %v3125_v1 = vld [vmem:[%s4344_s20 + $0x50] sm:$0xff]  }
0x155c   : > { %1917 = vadd.xlane.f32.xlu0 %v1914_v25  ;;  %v1922_v26 = vmul.f32 %v1914_v25, %v1914_v25 }
0x155d   : > { %2899 = vmatpush3.bf16.msra.mxu0 %v3125_v1 }
0x155e   : > { %1925 = vadd.xlane.f32.xlu1 %v1922_v26  ;;  %2900 = vmatprep.subr.bf16.mxu0 %v3468_v11 }
0x1560   : > { %1923 = vadd.xlane.f32.xlu0 %v1921_v27 }
0x1561   : > { %2901 = vmatpush3.bf16.msra.mxu0 %v3126_v28 }
0x1562   : > { %2902 = vmatprep.subr.bf16.mxu0 %v3468_v11 }
0x1565   : > { %2903 = vmatpush3.bf16.msra.mxu0 %v3127_v29 }
0x1566   : > { %2904 = vmatprep.subr.bf16.mxu0 %v3468_v11 }
0x1569   : > { %2905 = vmatpush3.bf16.msra.mxu0 %v3128_v32 }
0x156a   : > { %2906 = vmatprep.subr.bf16.mxu0 %v3468_v11 }
0x156d   : > { %2907 = vmatpush3.bf16.msra.mxu0 %v3129_v33 }
0x156e   : > { %2908 = vmatprep.subr.bf16.mxu0 %v3468_v11 }
0x1571   : > { %2909 = vmatpush3.bf16.msra.mxu0 %v3130_v35 }
0x1572   : > { %2934 = vmatprep.subr.bf16.mxu0 %v3468_v11 }
0x15e7   : > { %v1916_v36 = vpop.xlane.xlu1 %1915 }
0x15e8   : > { %v1919_v38 = vmul.f32 0.03125, %v1916_v36 }
0x15e9   : > { %v1918_v37 = vpop.xlane.xlu0 %1917 }
0x15ea   : > { %v1920_v39 = vmul.f32 0.03125, %v1918_v37  ;;  %v1929_v44 = vmul.f32 %v1919_v38, %v1919_v38  ;;  %v1933_v56 = vsub.f32 %v1913_v22, %v1919_v38 }
0x15eb   : > { %v1926_v40 = vpop.xlane.xlu1 %1925 }
0x15ec   : > { %v1930_v41 = vmul.f32 %v1920_v39, %v1920_v39  ;;  %v1928_v42 = vmul.f32 0.03125, %v1926_v40  ;;  %v1934_v49 = vsub.f32 %v1914_v25, %v1920_v39  ;;  %v2107_v39 = vrot.slane %v4138_v17, %v1347_v55  ;;  %v3140_v55 = vld [vmem:[#allocation11 + $0x8] sm:$0xff]  }
0x15ed   : > { %v1924_v43 = vpop.xlane.xlu0 %1923 }
0x15ee   : > { %v1932_v45 = vsub.f32 %v1928_v42, %v1930_v41  ;;  %v1927_v46 = vmul.f32 0.03125, %v1924_v43 }
0x15f0   : > { %v1936_v47 = vadd.f32 1e-12, %v1932_v45  ;;  %v1931_v30 = vsub.f32 %v1927_v46, %v1929_v44 }
0x15f2   : > { %3195 = vrsqrt.f32 %v1936_v47  ;;  %v1935_v48 = vadd.f32 1e-12, %v1931_v30 }
0x15f4   : > { %3197 = vrsqrt.f32 %v1935_v48 }
0x15fc   : > { %v3196_v53 = vpop.eup %3195 }
0x15fd   : > { %v1940_v57 = vmul.f32 %v3196_v53, %v1934_v49  ;;  %v3139_v49 = vld [vmem:[#allocation11] sm:$0xff]   ;;  %v3142_v53 = vld [vmem:[#allocation11 + $0x18] sm:$0xff]  }
0x15fe   : > { %v3198_v58 = vpop.eup %3197 }
0x15ff   : > { %v1939_v59 = vmul.f32 %v3198_v58, %v1933_v56  ;;  %v1946_v60 = vmul.f32 %v1944_v14, %v1940_v57  ;;  %v3143_v56 = vld [vmem:[#allocation11 + $0x20] sm:$0xff]   ;;  %v3144_v57 = vld [vmem:[#allocation11 + $0x28] sm:$0xff]   ;;  %v3145_v58 = vld [vmem:[#allocation11 + $0x30] sm:$0xff]  }
0x1601   : > { %v1945_v62 = vmul.f32 %v1944_v14, %v1939_v59  ;;  %v4181_v52 = vadd.f32 %v1950_v61, %v1946_v60  ;;  %v3141_v14 = vld [vmem:[#allocation11 + $0x10] sm:$0xff]   ;;  %v3146_v59 = vld [vmem:[#allocation11 + $0x38] sm:$0xff]  }
0x1603   : > { %v1951_v63 = vadd.f32 %v1950_v61, %v1945_v62 }
0x1605   : > { %v1953_v2 = vpack.c.bf16 %v4181_v52, %v1951_v63 }
0x1607   : > { %2911 = vmatmul.mubr.bf16.vlgmr.msra.gmra.mrb[36].mxu0 %v1953_v2 }
0x1608   : > { %2950 = vmatprep.mubr.msk.bf16.mxu0 %vm3469_vm3, %v3468_v11  ;;  %2935 = vmatpush3.bf16.msra.mxu0 %v3139_v49 }
0x1609   : > { %2936 = vmatprep.subr.bf16.mxu0 %v3468_v11 }
0x160c   : > { %2937 = vmatpush3.bf16.msra.mxu0 %v3140_v55 }
0x160d   : > { %2938 = vmatprep.subr.bf16.mxu0 %v3468_v11 }
0x1610   : > { %2939 = vmatpush3.bf16.msra.mxu0 %v3141_v14 }
0x1611   : > { %2940 = vmatprep.subr.bf16.mxu0 %v3468_v11 }
0x1614   : > { %2941 = vmatpush3.bf16.msra.mxu0 %v3142_v53 }
0x1615   : > { %2942 = vmatprep.subr.bf16.mxu0 %v3468_v11 }
0x1618   : > { %2943 = vmatpush3.bf16.msra.mxu0 %v3143_v56 }
0x1619   : > { %2944 = vmatprep.subr.bf16.mxu0 %v3468_v11 }
0x161c   : > { %2945 = vmatpush3.bf16.msra.mxu0 %v3144_v57 }
0x161d   : > { %2946 = vmatprep.subr.bf16.mxu0 %v3468_v11 }
0x1620   : > { %2947 = vmatpush3.bf16.msra.mxu0 %v3145_v58 }
0x1621   : > { %2948 = vmatprep.subr.bf16.mxu0 %v3468_v11  ;;  %v2228_v11 = vrot.slane %v4138_v17, %v1468_v31 }
0x1624   : > { %2949 = vmatpush3.bf16.msra.mxu0 %v3146_v59 }
0x16da   : > { %v2061_v13 = vpop.f32.mrb[36].mxu0 }
0x16db   : > { %v2062_v15 = vadd.f32 %v2594_v12, %v2061_v13  ;;  %v2912_v16 = vpop.f32.mrb[37].mxu0 }
0x16dc   : > { %v2064_v18 = vpop.f32.mrb[38].mxu0 }
0x16dd   : > { %v2070_v10 = vmul.f32 0.044715, %v2062_v15  ;;  %v2065_v19 = vadd.f32 %v2594_v12, %v2064_v18  ;;  %v2913_v20 = vpop.f32.mrb[39].mxu0  ;;  %v2068_v32 = vmul.f32 0.5, %v2062_v15 }
0x16de   : > { %v2234_v20 = vrot.slane %v4138_v17, %v1474_v34 }
0x16df   : > { %v2072_v21 = vmul.f32 %v2070_v10, %v2062_v15  ;;  %v2071_v22 = vmul.f32 0.044715, %v2065_v19  ;;  %v2069_v33 = vmul.f32 0.5, %v2065_v19 }
0x16e1   : > { %v2074_v23 = vmul.f32 %v2072_v21, %v2062_v15  ;;  %v2073_v24 = vmul.f32 %v2071_v22, %v2065_v19 }
0x16e3   : > { %v2076_v25 = vadd.f32 %v2074_v23, %v2062_v15  ;;  %v2075_v26 = vmul.f32 %v2073_v24, %v2065_v19 }
0x16e5   : > { %v2078_v27 = vmul.f32 0.7978845, %v2076_v25  ;;  %v2077_v51 = vadd.f32 %v2075_v26, %v2065_v19 }
0x16e7   : > { %3199 = vtanh.f32 %v2078_v27  ;;  %v2079_v0 = vmul.f32 0.7978845, %v2077_v51 }
0x16e9   : > { %3201 = vtanh.f32 %v2079_v0 }
0x16f1   : > { %v3200_v1 = vpop.eup %3199 }
0x16f2   : > { %v2082_v28 = vadd.f32 1.0, %v3200_v1 }
0x16f3   : > { %v3202_v29 = vpop.eup %3201 }
0x16f4   : > { %v2083_v35 = vadd.f32 1.0, %v3202_v29  ;;  %v2084_v36 = vmul.f32 %v2082_v28, %v2068_v32 }
0x16f6   : > { %v2085_v37 = vmul.f32 %v2083_v35, %v2069_v33 }
0x16f8   : > { %v2086_v38 = vpack.c.bf16 %v2085_v37, %v2084_v36 }
0x16fa   : > { %2931 = vmatmul.mubr.bf16.vlgmr.msra.gmra.mrb[24].mxu1 %v2086_v38 }
0x17cd   : > { %v2190_v40 = vpop.f32.mrb[24].mxu1 }
0x17ce   : > { %v2191_v41 = vadd.f32 %v2190_v40, %v2107_v39  ;;  %v2932_v42 = vpop.f32.mrb[25].mxu1 }
0x17cf   : > { %v2193_v43 = vpop.f32.mrb[26].mxu1 }
0x17d0   : > { %v2197_v44 = vadd.f32 %v2191_v41, %v1951_v63  ;;  %v2194_v45 = vadd.f32 %v2193_v43, %v2107_v39  ;;  %v2933_v46 = vpop.f32.mrb[27].mxu1 }
0x17d2   : > { %v2198_v47 = vadd.f32 %v2194_v45, %v4181_v52  ;;  %2199 = vadd.xlane.f32.xlu0 %v2197_v44  ;;  %v2205_v30 = vmul.f32 %v2197_v44, %v2197_v44 }
0x17d4   : > { %2201 = vadd.xlane.f32.xlu1 %v2198_v47  ;;  %v2206_v48 = vmul.f32 %v2198_v47, %v2198_v47 }
0x17d6   : > { %2207 = vadd.xlane.f32.xlu0 %v2205_v30 }
0x17d8   : > { %2209 = vadd.xlane.f32.xlu1 %v2206_v48 }
0x185f   : > { %v2200_v60 = vpop.xlane.xlu0 %2199 }
0x1860   : > { %v2203_v61 = vmul.f32 0.03125, %v2200_v60 }
0x1861   : > { %v2202_v62 = vpop.xlane.xlu1 %2201 }
0x1862   : > { %v2204_v63 = vmul.f32 0.03125, %v2202_v62  ;;  %v2213_v2 = vmul.f32 %v2203_v61, %v2203_v61  ;;  %v2217_v12 = vsub.f32 %v2197_v44, %v2203_v61 }
0x1863   : > { %v2208_v52 = vpop.xlane.xlu0 %2207 }
0x1864   : > { %v2211_v54 = vmul.f32 0.03125, %v2208_v52  ;;  %v2214_v3 = vmul.f32 %v2204_v63, %v2204_v63  ;;  %v2218_v15 = vsub.f32 %v2198_v47, %v2204_v63 }
0x1865   : > { %v2210_v5 = vpop.xlane.xlu1 %2209 }
0x1866   : > { %v2215_v4 = vsub.f32 %v2211_v54, %v2213_v2  ;;  %v2212_v6 = vmul.f32 0.03125, %v2210_v5 }
0x1868   : > { %v2219_v7 = vadd.f32 1e-12, %v2215_v4  ;;  %v2216_v8 = vsub.f32 %v2212_v6, %v2214_v3 }
0x186a   : > { %3203 = vrsqrt.f32 %v2219_v7  ;;  %v2220_v9 = vadd.f32 1e-12, %v2216_v8 }
0x186c   : > { %3205 = vrsqrt.f32 %v2220_v9 }
0x1874   : > { %v3204_v13 = vpop.eup %3203 }
0x1875   : > { %v2223_v16 = vmul.f32 %v3204_v13, %v2217_v12 }
0x1876   : > { %v3206_v18 = vpop.eup %3205 }
0x1877   : > { %v2229_v10 = vmul.f32 %v2228_v11, %v2223_v16  ;;  %v2224_v19 = vmul.f32 %v3206_v18, %v2218_v15 }
0x1879   : > { %v2230_v21 = vmul.f32 %v2228_v11, %v2224_v19  ;;  %v2235_v22 = vadd.f32 %v2234_v20, %v2229_v10 }
0x187b   : > { %v2236_v23 = vadd.f32 %v2234_v20, %v2230_v21 }
0x187d   : > { %v2237_v24 = vadd.f32 %v2236_v23, %v2235_v22 }
0x187f   : > { %v2238_v25 = vrot.slane %v2237_v24, 4 }
0x1881   : > { %v2239_v26 = vadd.f32 %v2238_v25, %v2237_v24 }
0x1883   : > { %v2240_v27 = vrot.slane %v2239_v26, 2 }
0x1885   : > { %v2241_v31 = vadd.f32 %v2240_v27, %v2239_v26 }
0x1887   : > { %v2242_v51 = vrot.slane %v2241_v31, 1 }
0x1889   : > { %v2243_v0 = vadd.f32 %v2242_v51, %v2241_v31 }
0x188b   : > { %v2244_v1 = vmul.f32 0.0625, %v2243_v0 }
0x188d   : > { %v2245_v28 = vpack.c.bf16 %v2244_v1, %v2244_v1 }
0x188f   : > { %2951 = vmatmul.mubr.bf16.vlgmr.msra.gmra.mrb[40].mxu0 %v2245_v28 }
0x1962   : > { %v2345_v34 = vpop.f32.mrb[40].mxu0 }
0x1963   : > { %v2346_v17 = vadd.f32 %v2345_v34, %v2262_v50  ;;  %v2952_v29 = vpop.f32.mrb[41].mxu0 }
0x1964   : > { %v2348_v32 = vpop.f32.mrb[42].mxu0 }
0x1965   : > { %2351 = vst [vmem:[%s564_s8] sm:$0x1] %v2346_v17  ;;  %v2953_v33 = vpop.f32.mrb[43].mxu0 }
0x1966   : > { %3390 = shalt.err (!%p3387_p6)
}
0x1967   : > { %s3391_s9 = scalar_lea.hbm %s4245_s1, 16  ;;  %s3395_s18 = scalar_lea.hbm %s4354_s0, 32 }
0x1968   : > { %p3392_p10 = scmp.ne.s32.totalorder %s4245_s1, %s3391_s9  ;;  %p3396_p5 = scmp.lt.u32.totalorder %s4245_s1, %s4354_s0 }
0x1969   : > { %p3397_p9 = scmp.lt.u32.totalorder %s3395_s18, %s3391_s9  ;;  %p3399_p4 = scmp.lt.u32.totalorder %s3391_s9, %s4245_s1 }
0x196a   : > { %p3393_p11 = pnand %p3392_p10, %p4355_p12 }
0x196b   : > { %p3398_p7 = por %p3397_p9, %p3396_p5 }
0x196c   : > { %p3394_p8 = pneg %p3393_p11 }
0x196d   : > { %p3400_p1 = por %p3399_p4, %p3398_p7 }
0x196f   : > { %p3401_p13 = pnand %p3400_p1, %p3394_p8 }
0x1971   : > { %3404 = shalt.err (!%p3401_p13)
}
0x1972   : > { %2988 = dma.vmem_to_hbm [thread:$0]  (%p4355_p12), %s4247_s21, 16, %s4245_s1, %s2353_s22  }
0x1973 PF: > { %s2377_s19 = sand.u32 1, %s3443_s29   ;;  %p4356_p0 = scmp.ne.s32.totalorder %s4332_s11, 0 }
0x1974   : > { %p4357_p2 = scmp.ge.s32.totalorder %s3455_s16, 2  ;;  %s2378_s10 = scalar_lea.sflag [#allocation4], %s2377_s19 }
0x1976   : > { %p3011_p3 = pnand %p4357_p2, %p4356_p0 }
0x1978   : > { %3438 = dma.done.wait (!%p3011_p3), %s2378_s10, 16  }
0x1979   : > { %3440 = vsyncadd (!%p3011_p3), %s2378_s10, 4294967280  ;;  %p30_p6 = scmp.ge.s32.totalorder %s3716_s23, 4   ;;  %s4358_s29 = smov %s3447_s30 }
0x197a   : > { %s4359_s30 = smov %s3451_s15  ;;  %s4360_s15 = smov %s3728_s28 }
0x197b   : > { %s4361_s16 = smov %s3716_s23  ;;  %32 = sbr.rel (!%p30_p6) target bundleno = 17 (0x11), region = 151 }
0x1982   :  { %2382 = vsyncpa [#allocation3], 1 }
0x1983   :  { %2384 = vsyncpa [#allocation3 + $0x1], 1 }
0x1984   :  { %2385 = vsyncpa [#allocation6], 1 }
0x1985   :  { %2386 = vsyncpa [#allocation9], 1 }
0x1986   :  { %2387 = vsyncpa [#allocation12], 1 }
0x1987   :  { %2388 = vsyncpa [#allocation4], 1 }
0x1988   :  { %2390 = vsyncpa [#allocation4 + $0x1], 1 }

</bundles_post_ra>
